<compile_context>
chip_gen: v6e
topology: v6e:2x2x1
jax: 0.10.0
libtpu: 0.0.40
codegen_flags: <defaults>
</compile_context>

<pallas_src>
import jax
import jax.numpy as jnp
from jax.experimental import pallas as pl
from jax.experimental.pallas import tpu as pltpu


# ----------------------------------------------------------------------------
# Pallas kernel: full ResLSTM recurrence (unrolled time x layer) + 2-layer FC
# ----------------------------------------------------------------------------
def rlstm_kernel(x_ref,                     # (T*B, H)  time-major, zero-padded feats
                 wx_ref,                    # (L, H, 5H)   [Wii^T | 0 | Wir^T]
                 whc_ref,                   # (L, 2H, 5H)  [[Wih^T|Whh^T|0],[Wic^T|0|0]]
                 b_ref,                     # (L, 1, 5H)   [bii+bih+bic | bhh | 0]
                 fc1w_ref, fc1b_ref,        # (H, D), (1, D)
                 fc2w_ref, fc2b_ref,        # (D, O), (1, O)
                 out_ref):                  # (B, O)
    TB = x_ref.shape[0]
    L, H, _ = wx_ref.shape
    B = out_ref.shape[0]
    T = TB // B
    f32 = jnp.float32

    # Hoist per-layer weight / bias reads out of the (unrolled) time loop.
    wx = [wx_ref[j] for j in range(L)]      # (H, 5H)
    whc = [whc_ref[j] for j in range(L)]    # (2H, 5H)
    bias = [b_ref[j] for j in range(L)]     # (1, 5H)

    # Hoisted layer-0 input projection for ALL timesteps (one big matmul),
    # with layer-0's fused bias folded in.
    xproj0 = jnp.dot(x_ref[...], wx[0], preferred_element_type=f32) + bias[0]  # (T*B, 5H)

    h = [jnp.zeros((B, H), f32) for _ in range(L)]
    c = [jnp.zeros((B, H), f32) for _ in range(L)]

    def cell(g, cx):
        # g columns: [ingate | forget | out | cellgate_pre | residual]
        ingate = jax.nn.sigmoid(g[:, 0 * H:1 * H])
        forgetgate = jax.nn.sigmoid(g[:, 1 * H:2 * H])
        outgate = jax.nn.sigmoid(g[:, 2 * H:3 * H])
        cellgate = jnp.tanh(g[:, 3 * H:4 * H])
        resid = g[:, 4 * H:5 * H]
        cy = forgetgate * cx + ingate * cellgate
        hy = outgate * (jnp.tanh(cy) + resid)
        return hy, cy

    # Fully unrolled recurrence (T and L are small, static).
    for t in range(T):
        out = None
        for j in range(L):
            hc = jnp.concatenate([h[j], c[j]], axis=1)                   # (B, 2H)
            g = jnp.dot(hc, whc[j], preferred_element_type=f32)
            if j == 0:
                g = g + xproj0[t * B:(t + 1) * B, :]
            else:
                g = g + jnp.dot(out, wx[j], preferred_element_type=f32) + bias[j]
            out, cy = cell(g, c[j])
            h[j] = out
            c[j] = cy

    # FC head on the last layer's final hidden state: Linear -> ReLU -> Linear.
    y = jnp.dot(h[L - 1], fc1w_ref[...], preferred_element_type=f32) + fc1b_ref[...]
    y = jnp.maximum(y, 0.0)
    y = jnp.dot(y, fc2w_ref[...], preferred_element_type=f32) + fc2b_ref[...]
    out_ref[...] = y


# ----------------------------------------------------------------------------
# Parameter construction (deterministic, PyTorch-shaped), then kernel packing
# ----------------------------------------------------------------------------
def init_raw_params(key, n_cols, hidden, num_layers, dense_units, output_horizon):
    """Deterministic stand-in for torch.randn parameter init (scaled for non-saturation)."""
    scale = 0.1
    cells = []
    in_sz = n_cols
    for _ in range(num_layers):
        key, *ks = jax.random.split(key, 9)
        cells.append(dict(
            weight_ii=scale * jax.random.normal(ks[0], (3 * hidden, in_sz), jnp.float32),
            weight_ic=scale * jax.random.normal(ks[1], (3 * hidden, hidden), jnp.float32),
            weight_ih=scale * jax.random.normal(ks[2], (3 * hidden, hidden), jnp.float32),
            bias_ii=scale * jax.random.normal(ks[3], (3 * hidden,), jnp.float32),
            bias_ic=scale * jax.random.normal(ks[4], (3 * hidden,), jnp.float32),
            bias_ih=scale * jax.random.normal(ks[5], (3 * hidden,), jnp.float32),
            weight_hh=scale * jax.random.normal(ks[6], (hidden, hidden), jnp.float32),
            bias_hh=scale * jax.random.normal(ks[7], (hidden,), jnp.float32),
            weight_ir=scale * jax.random.normal(
                jax.random.fold_in(ks[7], 1), (hidden, in_sz), jnp.float32),
        ))
        in_sz = hidden
    key, k1, k2, k3, k4 = jax.random.split(key, 5)
    return dict(
        cells=cells,
        hidden_size=hidden,
        fc1_w=scale * jax.random.normal(k1, (dense_units, hidden), jnp.float32),
        fc1_b=scale * jax.random.normal(k2, (dense_units,), jnp.float32),
        fc2_w=scale * jax.random.normal(k3, (output_horizon, dense_units), jnp.float32),
        fc2_b=scale * jax.random.normal(k4, (output_horizon,), jnp.float32),
    )


def pack_kernel_params(raw):
    """Fuse/pad/transpose PyTorch-shaped weights into the kernel's stacked layout."""
    cells = raw['cells']
    H = raw['hidden_size']

    wx_l, whc_l, b_l = [], [], []
    for cll in cells:
        in_sz = cll['weight_ii'].shape[1]
        assert in_sz <= H, "packing assumes N_cols <= hidden_size"
        # x / previous-layer-output path: [Wii^T | 0 | Wir^T], rows padded to H.
        wx = jnp.concatenate([cll['weight_ii'].T,
                              jnp.zeros((in_sz, H), jnp.float32),
                              cll['weight_ir'].T], axis=1)              # (in, 5H)
        wx = jnp.pad(wx, ((0, H - in_sz), (0, 0)))                      # (H, 5H)
        # [hx | cx] path.
        wh = jnp.concatenate([cll['weight_ih'].T, cll['weight_hh'].T,
                              jnp.zeros((H, H), jnp.float32)], axis=1)  # (H, 5H)
        wc = jnp.concatenate([cll['weight_ic'].T,
                              jnp.zeros((H, 2 * H), jnp.float32)], axis=1)
        whc = jnp.concatenate([wh, wc], axis=0)                         # (2H, 5H)
        # Fused bias row: [bii+bih+bic | bhh | 0].
        b = jnp.concatenate([cll['bias_ii'] + cll['bias_ih'] + cll['bias_ic'],
                             cll['bias_hh'],
                             jnp.zeros((H,), jnp.float32)])[None, :]    # (1, 5H)
        wx_l.append(wx)
        whc_l.append(whc)
        b_l.append(b)

    wx = jnp.stack(wx_l)        # (L, H, 5H)
    whc = jnp.stack(whc_l)      # (L, 2H, 5H)
    bias = jnp.stack(b_l)       # (L, 1, 5H)
    fc1w = raw['fc1_w'].T       # (H, D)
    fc1b = raw['fc1_b'][None, :]
    fc2w = raw['fc2_w'].T       # (D, O)
    fc2b = raw['fc2_b'][None, :]
    return wx, whc, bias, fc1w, fc1b, fc2w, fc2b


# ----------------------------------------------------------------------------
# Wrapper: PyTorch-equivalent forward via the Pallas kernel
# ----------------------------------------------------------------------------
def rlstm_forward(inputs, raw):
    """inputs: (B, N_cols, T) float32  ->  (B, 1, output_horizon) float32."""
    B, n_cols, T = inputs.shape
    H = raw['hidden_size']
    out_horizon = raw['fc2_w'].shape[0]

    # PyTorch does permute(2, 0, 1) -> (T, B, N_cols); flatten time-major and
    # zero-pad the feature dim to hidden_size so all layers share one stack.
    x = jnp.transpose(inputs, (2, 0, 1)).astype(jnp.float32).reshape(T * B, n_cols)
    x = jnp.pad(x, ((0, 0), (0, H - n_cols)))

    kparams = pack_kernel_params(raw)

    vmem = pl.BlockSpec(memory_space=pltpu.MemorySpace.VMEM)
    out = pl.pallas_call(
        rlstm_kernel,
        out_shape=jax.ShapeDtypeStruct((B, out_horizon), jnp.float32),
        in_specs=[vmem] * (1 + len(kparams)),
        out_specs=vmem,
    )(x, *kparams)

    return out[:, None, :]      # unsqueeze(1)


# ----------------------------------------------------------------------------
# Pure-JAX reference (mirrors the PyTorch module exactly) for verification
# ----------------------------------------------------------------------------
def rlstm_reference(inputs, raw):
    B, n_cols, T = inputs.shape
    H = raw['hidden_size']
    L = len(raw['cells'])
    x = jnp.transpose(inputs, (2, 0, 1))
    h = jnp.zeros((L, B, H), jnp.float32)
    c = jnp.zeros((L, B, H), jnp.float32)
    out = None
    for t in range(T):
        out = x[t]
        nh, nc = [], []
        for j, cell in enumerate(raw['cells']):
            hx, cx = h[j], c[j]
            ifo = (out @ cell['weight_ii'].T + cell['bias_ii']
                   + hx @ cell['weight_ih'].T + cell['bias_ih']
                   + cx @ cell['weight_ic'].T + cell['bias_ic'])
            ingate, forgetgate, outgate = jnp.split(ifo, 3, axis=1)
            cellgate = jnp.tanh(hx @ cell['weight_hh'].T + cell['bias_hh'])
            ingate = jax.nn.sigmoid(ingate)
            forgetgate = jax.nn.sigmoid(forgetgate)
            outgate = jax.nn.sigmoid(outgate)
            cy = forgetgate * cx + ingate * cellgate
            ry = jnp.tanh(cy)
            hy = outgate * (ry + out @ cell['weight_ir'].T)
            out = hy
            nh.append(hy)
            nc.append(cy)
        h = jnp.stack(nh)
        c = jnp.stack(nc)
    y = jnp.maximum(out @ raw['fc1_w'].T + raw['fc1_b'], 0.0)
    y = y @ raw['fc2_w'].T + raw['fc2_b']
    return y[:, None, :]


if __name__ == "__main__":
    # Module hyperparameters (small):
    #   input_horizon (T) = 8, output_horizon = 4, N_cols = 4, hidden_size = 32,
    #   num_layers = 2, dropout = 0.0, dense_units = 16, activation = 'relu',
    #   n_fc_layers = 1.
    B, N_COLS, T = 2, 4, 8
    HIDDEN, NUM_LAYERS = 32, 2
    DENSE, OUT_HORIZON = 16, 4

    key = jax.random.PRNGKey(0)
    key, pkey, xkey = jax.random.split(key, 3)
    raw = init_raw_params(pkey, N_COLS, HIDDEN, NUM_LAYERS, DENSE, OUT_HORIZON)

    inputs = jax.random.normal(xkey, (B, N_COLS, T), jnp.float32)

    out = jax.block_until_ready(rlstm_forward(inputs, raw))
    ref = rlstm_reference(inputs, raw)

    assert out.shape == (B, 1, OUT_HORIZON), out.shape
    max_diff = float(jnp.max(jnp.abs(out - ref)))
    assert jnp.allclose(out, ref, atol=1e-4, rtol=1e-4), f"max abs diff = {max_diff}"

    print("KERNEL_OK")
</pallas_src>

<mosaic_0001>
module attributes {stable_mosaic.version = 11 : i64} {
  func.func @rlstm_kernel(%arg0: memref<16x32xf32, #tpu.memory_space<vmem>>, %arg1: memref<2x32x160xf32, #tpu.memory_space<vmem>>, %arg2: memref<2x64x160xf32, #tpu.memory_space<vmem>>, %arg3: memref<2x1x160xf32, #tpu.memory_space<vmem>>, %arg4: memref<32x16xf32, #tpu.memory_space<vmem>>, %arg5: memref<1x16xf32, #tpu.memory_space<vmem>>, %arg6: memref<16x4xf32, #tpu.memory_space<vmem>>, %arg7: memref<1x4xf32, #tpu.memory_space<vmem>>, %arg8: memref<2x4xf32, #tpu.memory_space<vmem>>) attributes {dimension_semantics = [], scalar_prefetch = 0 : i64, scratch_operands = 0 : i64, tpu.core_type = #tpu.core_type<tc>} {
    %c0 = arith.constant 0 : index
    %c0_0 = arith.constant 0 : index
    %c0_1 = arith.constant 0 : index
    %0 = vector.load %arg1[%c0, %c0_0, %c0_1] : memref<2x32x160xf32, #tpu.memory_space<vmem>>, vector<1x32x160xf32>
    %1 = vector.shape_cast %0 : vector<1x32x160xf32> to vector<32x160xf32>
    %c1 = arith.constant 1 : index
    %c0_2 = arith.constant 0 : index
    %c0_3 = arith.constant 0 : index
    %2 = vector.load %arg1[%c1, %c0_2, %c0_3] : memref<2x32x160xf32, #tpu.memory_space<vmem>>, vector<1x32x160xf32>
    %3 = vector.shape_cast %2 : vector<1x32x160xf32> to vector<32x160xf32>
    %c0_4 = arith.constant 0 : index
    %c0_5 = arith.constant 0 : index
    %c0_6 = arith.constant 0 : index
    %4 = vector.load %arg2[%c0_4, %c0_5, %c0_6] : memref<2x64x160xf32, #tpu.memory_space<vmem>>, vector<1x64x160xf32>
    %5 = vector.shape_cast %4 : vector<1x64x160xf32> to vector<64x160xf32>
    %c1_7 = arith.constant 1 : index
    %c0_8 = arith.constant 0 : index
    %c0_9 = arith.constant 0 : index
    %6 = vector.load %arg2[%c1_7, %c0_8, %c0_9] : memref<2x64x160xf32, #tpu.memory_space<vmem>>, vector<1x64x160xf32>
    %7 = vector.shape_cast %6 : vector<1x64x160xf32> to vector<64x160xf32>
    %c0_10 = arith.constant 0 : index
    %c0_11 = arith.constant 0 : index
    %c0_12 = arith.constant 0 : index
    %8 = vector.load %arg3[%c0_10, %c0_11, %c0_12] : memref<2x1x160xf32, #tpu.memory_space<vmem>>, vector<1x1x160xf32>
    %9 = vector.shape_cast %8 : vector<1x1x160xf32> to vector<1x160xf32>
    %c1_13 = arith.constant 1 : index
    %c0_14 = arith.constant 0 : index
    %c0_15 = arith.constant 0 : index
    %10 = vector.load %arg3[%c1_13, %c0_14, %c0_15] : memref<2x1x160xf32, #tpu.memory_space<vmem>>, vector<1x1x160xf32>
    %11 = vector.shape_cast %10 : vector<1x1x160xf32> to vector<1x160xf32>
    %c0_16 = arith.constant 0 : index
    %c0_17 = arith.constant 0 : index
    %12 = vector.load %arg0[%c0_16, %c0_17] : memref<16x32xf32, #tpu.memory_space<vmem>>, vector<16x32xf32>
    %cst = arith.constant dense<0.000000e+00> : vector<16x160xf32>
    %13 = tpu.matmul %12, %1, %cst {dimension_numbers = #tpu.dot_dimension_numbers<[1], [0], [0], [1], [0, 0, 1, 1], [], []>} : vector<16x32xf32>, vector<32x160xf32>, vector<16x160xf32> -> vector<16x160xf32>
    %14 = vector.broadcast %9 : vector<1x160xf32> to vector<16x160xf32>
    %15 = arith.addf %13, %14 : vector<16x160xf32>
    %cst_18 = arith.constant 0.000000e+00 : f32
    %16 = vector.broadcast %cst_18 : f32 to vector<2x32xf32>
    %cst_19 = arith.constant 0.000000e+00 : f32
    %17 = vector.broadcast %cst_19 : f32 to vector<2x32xf32>
    %cst_20 = arith.constant 0.000000e+00 : f32
    %18 = vector.broadcast %cst_20 : f32 to vector<2x32xf32>
    %cst_21 = arith.constant 0.000000e+00 : f32
    %19 = vector.broadcast %cst_21 : f32 to vector<2x32xf32>
    %20 = tpu.concatenate %16, %18 in 1 : vector<2x32xf32>, vector<2x32xf32> -> vector<2x64xf32>
    %cst_22 = arith.constant dense<0.000000e+00> : vector<2x160xf32>
    %21 = tpu.matmul %20, %5, %cst_22 {dimension_numbers = #tpu.dot_dimension_numbers<[1], [0], [0], [1], [0, 0, 1, 1], [], []>} : vector<2x64xf32>, vector<64x160xf32>, vector<2x160xf32> -> vector<2x160xf32>
    %22 = vector.extract_strided_slice %15 {offsets = [0, 0], sizes = [2, 160], strides = [1, 1]} : vector<16x160xf32> to vector<2x160xf32>
    %23 = arith.addf %21, %22 : vector<2x160xf32>
    %24 = vector.extract_strided_slice %23 {offsets = [0, 0], sizes = [2, 32], strides = [1, 1]} : vector<2x160xf32> to vector<2x32xf32>
    %25 = arith.negf %24 : vector<2x32xf32>
    %26 = math.exp %25 : vector<2x32xf32>
    %cst_23 = arith.constant 1.000000e+00 : f32
    %27 = vector.broadcast %cst_23 : f32 to vector<2x32xf32>
    %28 = arith.addf %27, %26 : vector<2x32xf32>
    %29 = arith.divf %27, %28 : vector<2x32xf32>
    %30 = vector.extract_strided_slice %23 {offsets = [0, 32], sizes = [2, 32], strides = [1, 1]} : vector<2x160xf32> to vector<2x32xf32>
    %31 = arith.negf %30 : vector<2x32xf32>
    %32 = math.exp %31 : vector<2x32xf32>
    %cst_24 = arith.constant 1.000000e+00 : f32
    %33 = vector.broadcast %cst_24 : f32 to vector<2x32xf32>
    %34 = arith.addf %33, %32 : vector<2x32xf32>
    %35 = arith.divf %33, %34 : vector<2x32xf32>
    %36 = vector.extract_strided_slice %23 {offsets = [0, 64], sizes = [2, 32], strides = [1, 1]} : vector<2x160xf32> to vector<2x32xf32>
    %37 = arith.negf %36 : vector<2x32xf32>
    %38 = math.exp %37 : vector<2x32xf32>
    %cst_25 = arith.constant 1.000000e+00 : f32
    %39 = vector.broadcast %cst_25 : f32 to vector<2x32xf32>
    %40 = arith.addf %39, %38 : vector<2x32xf32>
    %41 = arith.divf %39, %40 : vector<2x32xf32>
    %42 = vector.extract_strided_slice %23 {offsets = [0, 96], sizes = [2, 32], strides = [1, 1]} : vector<2x160xf32> to vector<2x32xf32>
    %43 = math.tanh %42 : vector<2x32xf32>
    %44 = vector.extract_strided_slice %23 {offsets = [0, 128], sizes = [2, 32], strides = [1, 1]} : vector<2x160xf32> to vector<2x32xf32>
    %45 = arith.mulf %35, %18 : vector<2x32xf32>
    %46 = arith.mulf %29, %43 : vector<2x32xf32>
    %47 = arith.addf %45, %46 : vector<2x32xf32>
    %48 = math.tanh %47 : vector<2x32xf32>
    %49 = arith.addf %48, %44 : vector<2x32xf32>
    %50 = arith.mulf %41, %49 : vector<2x32xf32>
    %51 = tpu.concatenate %17, %19 in 1 : vector<2x32xf32>, vector<2x32xf32> -> vector<2x64xf32>
    %cst_26 = arith.constant dense<0.000000e+00> : vector<2x160xf32>
    %52 = tpu.matmul %51, %7, %cst_26 {dimension_numbers = #tpu.dot_dimension_numbers<[1], [0], [0], [1], [0, 0, 1, 1], [], []>} : vector<2x64xf32>, vector<64x160xf32>, vector<2x160xf32> -> vector<2x160xf32>
    %cst_27 = arith.constant dense<0.000000e+00> : vector<2x160xf32>
    %53 = tpu.matmul %50, %3, %cst_27 {dimension_numbers = #tpu.dot_dimension_numbers<[1], [0], [0], [1], [0, 0, 1, 1], [], []>} : vector<2x32xf32>, vector<32x160xf32>, vector<2x160xf32> -> vector<2x160xf32>
    %54 = arith.addf %52, %53 : vector<2x160xf32>
    %55 = vector.broadcast %11 : vector<1x160xf32> to vector<2x160xf32>
    %56 = arith.addf %54, %55 : vector<2x160xf32>
    %57 = vector.extract_strided_slice %56 {offsets = [0, 0], sizes = [2, 32], strides = [1, 1]} : vector<2x160xf32> to vector<2x32xf32>
    %58 = arith.negf %57 : vector<2x32xf32>
    %59 = math.exp %58 : vector<2x32xf32>
    %cst_28 = arith.constant 1.000000e+00 : f32
    %60 = vector.broadcast %cst_28 : f32 to vector<2x32xf32>
    %61 = arith.addf %60, %59 : vector<2x32xf32>
    %62 = arith.divf %60, %61 : vector<2x32xf32>
    %63 = vector.extract_strided_slice %56 {offsets = [0, 32], sizes = [2, 32], strides = [1, 1]} : vector<2x160xf32> to vector<2x32xf32>
    %64 = arith.negf %63 : vector<2x32xf32>
    %65 = math.exp %64 : vector<2x32xf32>
    %cst_29 = arith.constant 1.000000e+00 : f32
    %66 = vector.broadcast %cst_29 : f32 to vector<2x32xf32>
    %67 = arith.addf %66, %65 : vector<2x32xf32>
    %68 = arith.divf %66, %67 : vector<2x32xf32>
    %69 = vector.extract_strided_slice %56 {offsets = [0, 64], sizes = [2, 32], strides = [1, 1]} : vector<2x160xf32> to vector<2x32xf32>
    %70 = arith.negf %69 : vector<2x32xf32>
    %71 = math.exp %70 : vector<2x32xf32>
    %cst_30 = arith.constant 1.000000e+00 : f32
    %72 = vector.broadcast %cst_30 : f32 to vector<2x32xf32>
    %73 = arith.addf %72, %71 : vector<2x32xf32>
    %74 = arith.divf %72, %73 : vector<2x32xf32>
    %75 = vector.extract_strided_slice %56 {offsets = [0, 96], sizes = [2, 32], strides = [1, 1]} : vector<2x160xf32> to vector<2x32xf32>
    %76 = math.tanh %75 : vector<2x32xf32>
    %77 = vector.extract_strided_slice %56 {offsets = [0, 128], sizes = [2, 32], strides = [1, 1]} : vector<2x160xf32> to vector<2x32xf32>
    %78 = arith.mulf %68, %19 : vector<2x32xf32>
    %79 = arith.mulf %62, %76 : vector<2x32xf32>
    %80 = arith.addf %78, %79 : vector<2x32xf32>
    %81 = math.tanh %80 : vector<2x32xf32>
    %82 = arith.addf %81, %77 : vector<2x32xf32>
    %83 = arith.mulf %74, %82 : vector<2x32xf32>
    %84 = tpu.concatenate %50, %47 in 1 : vector<2x32xf32>, vector<2x32xf32> -> vector<2x64xf32>
    %cst_31 = arith.constant dense<0.000000e+00> : vector<2x160xf32>
    %85 = tpu.matmul %84, %5, %cst_31 {dimension_numbers = #tpu.dot_dimension_numbers<[1], [0], [0], [1], [0, 0, 1, 1], [], []>} : vector<2x64xf32>, vector<64x160xf32>, vector<2x160xf32> -> vector<2x160xf32>
    %86 = vector.extract_strided_slice %15 {offsets = [2, 0], sizes = [2, 160], strides = [1, 1]} : vector<16x160xf32> to vector<2x160xf32>
    %87 = arith.addf %85, %86 : vector<2x160xf32>
    %88 = vector.extract_strided_slice %87 {offsets = [0, 0], sizes = [2, 32], strides = [1, 1]} : vector<2x160xf32> to vector<2x32xf32>
    %89 = arith.negf %88 : vector<2x32xf32>
    %90 = math.exp %89 : vector<2x32xf32>
    %cst_32 = arith.constant 1.000000e+00 : f32
    %91 = vector.broadcast %cst_32 : f32 to vector<2x32xf32>
    %92 = arith.addf %91, %90 : vector<2x32xf32>
    %93 = arith.divf %91, %92 : vector<2x32xf32>
    %94 = vector.extract_strided_slice %87 {offsets = [0, 32], sizes = [2, 32], strides = [1, 1]} : vector<2x160xf32> to vector<2x32xf32>
    %95 = arith.negf %94 : vector<2x32xf32>
    %96 = math.exp %95 : vector<2x32xf32>
    %cst_33 = arith.constant 1.000000e+00 : f32
    %97 = vector.broadcast %cst_33 : f32 to vector<2x32xf32>
    %98 = arith.addf %97, %96 : vector<2x32xf32>
    %99 = arith.divf %97, %98 : vector<2x32xf32>
    %100 = vector.extract_strided_slice %87 {offsets = [0, 64], sizes = [2, 32], strides = [1, 1]} : vector<2x160xf32> to vector<2x32xf32>
    %101 = arith.negf %100 : vector<2x32xf32>
    %102 = math.exp %101 : vector<2x32xf32>
    %cst_34 = arith.constant 1.000000e+00 : f32
    %103 = vector.broadcast %cst_34 : f32 to vector<2x32xf32>
    %104 = arith.addf %103, %102 : vector<2x32xf32>
    %105 = arith.divf %103, %104 : vector<2x32xf32>
    %106 = vector.extract_strided_slice %87 {offsets = [0, 96], sizes = [2, 32], strides = [1, 1]} : vector<2x160xf32> to vector<2x32xf32>
    %107 = math.tanh %106 : vector<2x32xf32>
    %108 = vector.extract_strided_slice %87 {offsets = [0, 128], sizes = [2, 32], strides = [1, 1]} : vector<2x160xf32> to vector<2x32xf32>
    %109 = arith.mulf %99, %47 : vector<2x32xf32>
    %110 = arith.mulf %93, %107 : vector<2x32xf32>
    %111 = arith.addf %109, %110 : vector<2x32xf32>
    %112 = math.tanh %111 : vector<2x32xf32>
    %113 = arith.addf %112, %108 : vector<2x32xf32>
    %114 = arith.mulf %105, %113 : vector<2x32xf32>
    %115 = tpu.concatenate %83, %80 in 1 : vector<2x32xf32>, vector<2x32xf32> -> vector<2x64xf32>
    %cst_35 = arith.constant dense<0.000000e+00> : vector<2x160xf32>
    %116 = tpu.matmul %115, %7, %cst_35 {dimension_numbers = #tpu.dot_dimension_numbers<[1], [0], [0], [1], [0, 0, 1, 1], [], []>} : vector<2x64xf32>, vector<64x160xf32>, vector<2x160xf32> -> vector<2x160xf32>
    %cst_36 = arith.constant dense<0.000000e+00> : vector<2x160xf32>
    %117 = tpu.matmul %114, %3, %cst_36 {dimension_numbers = #tpu.dot_dimension_numbers<[1], [0], [0], [1], [0, 0, 1, 1], [], []>} : vector<2x32xf32>, vector<32x160xf32>, vector<2x160xf32> -> vector<2x160xf32>
    %118 = arith.addf %116, %117 : vector<2x160xf32>
    %119 = vector.broadcast %11 : vector<1x160xf32> to vector<2x160xf32>
    %120 = arith.addf %118, %119 : vector<2x160xf32>
    %121 = vector.extract_strided_slice %120 {offsets = [0, 0], sizes = [2, 32], strides = [1, 1]} : vector<2x160xf32> to vector<2x32xf32>
    %122 = arith.negf %121 : vector<2x32xf32>
    %123 = math.exp %122 : vector<2x32xf32>
    %cst_37 = arith.constant 1.000000e+00 : f32
    %124 = vector.broadcast %cst_37 : f32 to vector<2x32xf32>
    %125 = arith.addf %124, %123 : vector<2x32xf32>
    %126 = arith.divf %124, %125 : vector<2x32xf32>
    %127 = vector.extract_strided_slice %120 {offsets = [0, 32], sizes = [2, 32], strides = [1, 1]} : vector<2x160xf32> to vector<2x32xf32>
    %128 = arith.negf %127 : vector<2x32xf32>
    %129 = math.exp %128 : vector<2x32xf32>
    %cst_38 = arith.constant 1.000000e+00 : f32
    %130 = vector.broadcast %cst_38 : f32 to vector<2x32xf32>
    %131 = arith.addf %130, %129 : vector<2x32xf32>
    %132 = arith.divf %130, %131 : vector<2x32xf32>
    %133 = vector.extract_strided_slice %120 {offsets = [0, 64], sizes = [2, 32], strides = [1, 1]} : vector<2x160xf32> to vector<2x32xf32>
    %134 = arith.negf %133 : vector<2x32xf32>
    %135 = math.exp %134 : vector<2x32xf32>
    %cst_39 = arith.constant 1.000000e+00 : f32
    %136 = vector.broadcast %cst_39 : f32 to vector<2x32xf32>
    %137 = arith.addf %136, %135 : vector<2x32xf32>
    %138 = arith.divf %136, %137 : vector<2x32xf32>
    %139 = vector.extract_strided_slice %120 {offsets = [0, 96], sizes = [2, 32], strides = [1, 1]} : vector<2x160xf32> to vector<2x32xf32>
    %140 = math.tanh %139 : vector<2x32xf32>
    %141 = vector.extract_strided_slice %120 {offsets = [0, 128], sizes = [2, 32], strides = [1, 1]} : vector<2x160xf32> to vector<2x32xf32>
    %142 = arith.mulf %132, %80 : vector<2x32xf32>
    %143 = arith.mulf %126, %140 : vector<2x32xf32>
    %144 = arith.addf %142, %143 : vector<2x32xf32>
    %145 = math.tanh %144 : vector<2x32xf32>
    %146 = arith.addf %145, %141 : vector<2x32xf32>
    %147 = arith.mulf %138, %146 : vector<2x32xf32>
    %148 = tpu.concatenate %114, %111 in 1 : vector<2x32xf32>, vector<2x32xf32> -> vector<2x64xf32>
    %cst_40 = arith.constant dense<0.000000e+00> : vector<2x160xf32>
    %149 = tpu.matmul %148, %5, %cst_40 {dimension_numbers = #tpu.dot_dimension_numbers<[1], [0], [0], [1], [0, 0, 1, 1], [], []>} : vector<2x64xf32>, vector<64x160xf32>, vector<2x160xf32> -> vector<2x160xf32>
    %150 = vector.extract_strided_slice %15 {offsets = [4, 0], sizes = [2, 160], strides = [1, 1]} : vector<16x160xf32> to vector<2x160xf32>
    %151 = arith.addf %149, %150 : vector<2x160xf32>
    %152 = vector.extract_strided_slice %151 {offsets = [0, 0], sizes = [2, 32], strides = [1, 1]} : vector<2x160xf32> to vector<2x32xf32>
    %153 = arith.negf %152 : vector<2x32xf32>
    %154 = math.exp %153 : vector<2x32xf32>
    %cst_41 = arith.constant 1.000000e+00 : f32
    %155 = vector.broadcast %cst_41 : f32 to vector<2x32xf32>
    %156 = arith.addf %155, %154 : vector<2x32xf32>
    %157 = arith.divf %155, %156 : vector<2x32xf32>
    %158 = vector.extract_strided_slice %151 {offsets = [0, 32], sizes = [2, 32], strides = [1, 1]} : vector<2x160xf32> to vector<2x32xf32>
    %159 = arith.negf %158 : vector<2x32xf32>
    %160 = math.exp %159 : vector<2x32xf32>
    %cst_42 = arith.constant 1.000000e+00 : f32
    %161 = vector.broadcast %cst_42 : f32 to vector<2x32xf32>
    %162 = arith.addf %161, %160 : vector<2x32xf32>
    %163 = arith.divf %161, %162 : vector<2x32xf32>
    %164 = vector.extract_strided_slice %151 {offsets = [0, 64], sizes = [2, 32], strides = [1, 1]} : vector<2x160xf32> to vector<2x32xf32>
    %165 = arith.negf %164 : vector<2x32xf32>
    %166 = math.exp %165 : vector<2x32xf32>
    %cst_43 = arith.constant 1.000000e+00 : f32
    %167 = vector.broadcast %cst_43 : f32 to vector<2x32xf32>
    %168 = arith.addf %167, %166 : vector<2x32xf32>
    %169 = arith.divf %167, %168 : vector<2x32xf32>
    %170 = vector.extract_strided_slice %151 {offsets = [0, 96], sizes = [2, 32], strides = [1, 1]} : vector<2x160xf32> to vector<2x32xf32>
    %171 = math.tanh %170 : vector<2x32xf32>
    %172 = vector.extract_strided_slice %151 {offsets = [0, 128], sizes = [2, 32], strides = [1, 1]} : vector<2x160xf32> to vector<2x32xf32>
    %173 = arith.mulf %163, %111 : vector<2x32xf32>
    %174 = arith.mulf %157, %171 : vector<2x32xf32>
    %175 = arith.addf %173, %174 : vector<2x32xf32>
    %176 = math.tanh %175 : vector<2x32xf32>
    %177 = arith.addf %176, %172 : vector<2x32xf32>
    %178 = arith.mulf %169, %177 : vector<2x32xf32>
    %179 = tpu.concatenate %147, %144 in 1 : vector<2x32xf32>, vector<2x32xf32> -> vector<2x64xf32>
    %cst_44 = arith.constant dense<0.000000e+00> : vector<2x160xf32>
    %180 = tpu.matmul %179, %7, %cst_44 {dimension_numbers = #tpu.dot_dimension_numbers<[1], [0], [0], [1], [0, 0, 1, 1], [], []>} : vector<2x64xf32>, vector<64x160xf32>, vector<2x160xf32> -> vector<2x160xf32>
    %cst_45 = arith.constant dense<0.000000e+00> : vector<2x160xf32>
    %181 = tpu.matmul %178, %3, %cst_45 {dimension_numbers = #tpu.dot_dimension_numbers<[1], [0], [0], [1], [0, 0, 1, 1], [], []>} : vector<2x32xf32>, vector<32x160xf32>, vector<2x160xf32> -> vector<2x160xf32>
    %182 = arith.addf %180, %181 : vector<2x160xf32>
    %183 = vector.broadcast %11 : vector<1x160xf32> to vector<2x160xf32>
    %184 = arith.addf %182, %183 : vector<2x160xf32>
    %185 = vector.extract_strided_slice %184 {offsets = [0, 0], sizes = [2, 32], strides = [1, 1]} : vector<2x160xf32> to vector<2x32xf32>
    %186 = arith.negf %185 : vector<2x32xf32>
    %187 = math.exp %186 : vector<2x32xf32>
    %cst_46 = arith.constant 1.000000e+00 : f32
    %188 = vector.broadcast %cst_46 : f32 to vector<2x32xf32>
    %189 = arith.addf %188, %187 : vector<2x32xf32>
    %190 = arith.divf %188, %189 : vector<2x32xf32>
    %191 = vector.extract_strided_slice %184 {offsets = [0, 32], sizes = [2, 32], strides = [1, 1]} : vector<2x160xf32> to vector<2x32xf32>
    %192 = arith.negf %191 : vector<2x32xf32>
    %193 = math.exp %192 : vector<2x32xf32>
    %cst_47 = arith.constant 1.000000e+00 : f32
    %194 = vector.broadcast %cst_47 : f32 to vector<2x32xf32>
    %195 = arith.addf %194, %193 : vector<2x32xf32>
    %196 = arith.divf %194, %195 : vector<2x32xf32>
    %197 = vector.extract_strided_slice %184 {offsets = [0, 64], sizes = [2, 32], strides = [1, 1]} : vector<2x160xf32> to vector<2x32xf32>
    %198 = arith.negf %197 : vector<2x32xf32>
    %199 = math.exp %198 : vector<2x32xf32>
    %cst_48 = arith.constant 1.000000e+00 : f32
    %200 = vector.broadcast %cst_48 : f32 to vector<2x32xf32>
    %201 = arith.addf %200, %199 : vector<2x32xf32>
    %202 = arith.divf %200, %201 : vector<2x32xf32>
    %203 = vector.extract_strided_slice %184 {offsets = [0, 96], sizes = [2, 32], strides = [1, 1]} : vector<2x160xf32> to vector<2x32xf32>
    %204 = math.tanh %203 : vector<2x32xf32>
    %205 = vector.extract_strided_slice %184 {offsets = [0, 128], sizes = [2, 32], strides = [1, 1]} : vector<2x160xf32> to vector<2x32xf32>
    %206 = arith.mulf %196, %144 : vector<2x32xf32>
    %207 = arith.mulf %190, %204 : vector<2x32xf32>
    %208 = arith.addf %206, %207 : vector<2x32xf32>
    %209 = math.tanh %208 : vector<2x32xf32>
    %210 = arith.addf %209, %205 : vector<2x32xf32>
    %211 = arith.mulf %202, %210 : vector<2x32xf32>
    %212 = tpu.concatenate %178, %175 in 1 : vector<2x32xf32>, vector<2x32xf32> -> vector<2x64xf32>
    %cst_49 = arith.constant dense<0.000000e+00> : vector<2x160xf32>
    %213 = tpu.matmul %212, %5, %cst_49 {dimension_numbers = #tpu.dot_dimension_numbers<[1], [0], [0], [1], [0, 0, 1, 1], [], []>} : vector<2x64xf32>, vector<64x160xf32>, vector<2x160xf32> -> vector<2x160xf32>
    %214 = vector.extract_strided_slice %15 {offsets = [6, 0], sizes = [2, 160], strides = [1, 1]} : vector<16x160xf32> to vector<2x160xf32>
    %215 = arith.addf %213, %214 : vector<2x160xf32>
    %216 = vector.extract_strided_slice %215 {offsets = [0, 0], sizes = [2, 32], strides = [1, 1]} : vector<2x160xf32> to vector<2x32xf32>
    %217 = arith.negf %216 : vector<2x32xf32>
    %218 = math.exp %217 : vector<2x32xf32>
    %cst_50 = arith.constant 1.000000e+00 : f32
    %219 = vector.broadcast %cst_50 : f32 to vector<2x32xf32>
    %220 = arith.addf %219, %218 : vector<2x32xf32>
    %221 = arith.divf %219, %220 : vector<2x32xf32>
    %222 = vector.extract_strided_slice %215 {offsets = [0, 32], sizes = [2, 32], strides = [1, 1]} : vector<2x160xf32> to vector<2x32xf32>
    %223 = arith.negf %222 : vector<2x32xf32>
    %224 = math.exp %223 : vector<2x32xf32>
    %cst_51 = arith.constant 1.000000e+00 : f32
    %225 = vector.broadcast %cst_51 : f32 to vector<2x32xf32>
    %226 = arith.addf %225, %224 : vector<2x32xf32>
    %227 = arith.divf %225, %226 : vector<2x32xf32>
    %228 = vector.extract_strided_slice %215 {offsets = [0, 64], sizes = [2, 32], strides = [1, 1]} : vector<2x160xf32> to vector<2x32xf32>
    %229 = arith.negf %228 : vector<2x32xf32>
    %230 = math.exp %229 : vector<2x32xf32>
    %cst_52 = arith.constant 1.000000e+00 : f32
    %231 = vector.broadcast %cst_52 : f32 to vector<2x32xf32>
    %232 = arith.addf %231, %230 : vector<2x32xf32>
    %233 = arith.divf %231, %232 : vector<2x32xf32>
    %234 = vector.extract_strided_slice %215 {offsets = [0, 96], sizes = [2, 32], strides = [1, 1]} : vector<2x160xf32> to vector<2x32xf32>
    %235 = math.tanh %234 : vector<2x32xf32>
    %236 = vector.extract_strided_slice %215 {offsets = [0, 128], sizes = [2, 32], strides = [1, 1]} : vector<2x160xf32> to vector<2x32xf32>
    %237 = arith.mulf %227, %175 : vector<2x32xf32>
    %238 = arith.mulf %221, %235 : vector<2x32xf32>
    %239 = arith.addf %237, %238 : vector<2x32xf32>
    %240 = math.tanh %239 : vector<2x32xf32>
    %241 = arith.addf %240, %236 : vector<2x32xf32>
    %242 = arith.mulf %233, %241 : vector<2x32xf32>
    %243 = tpu.concatenate %211, %208 in 1 : vector<2x32xf32>, vector<2x32xf32> -> vector<2x64xf32>
    %cst_53 = arith.constant dense<0.000000e+00> : vector<2x160xf32>
    %244 = tpu.matmul %243, %7, %cst_53 {dimension_numbers = #tpu.dot_dimension_numbers<[1], [0], [0], [1], [0, 0, 1, 1], [], []>} : vector<2x64xf32>, vector<64x160xf32>, vector<2x160xf32> -> vector<2x160xf32>
    %cst_54 = arith.constant dense<0.000000e+00> : vector<2x160xf32>
    %245 = tpu.matmul %242, %3, %cst_54 {dimension_numbers = #tpu.dot_dimension_numbers<[1], [0], [0], [1], [0, 0, 1, 1], [], []>} : vector<2x32xf32>, vector<32x160xf32>, vector<2x160xf32> -> vector<2x160xf32>
    %246 = arith.addf %244, %245 : vector<2x160xf32>
    %247 = vector.broadcast %11 : vector<1x160xf32> to vector<2x160xf32>
    %248 = arith.addf %246, %247 : vector<2x160xf32>
    %249 = vector.extract_strided_slice %248 {offsets = [0, 0], sizes = [2, 32], strides = [1, 1]} : vector<2x160xf32> to vector<2x32xf32>
    %250 = arith.negf %249 : vector<2x32xf32>
    %251 = math.exp %250 : vector<2x32xf32>
    %cst_55 = arith.constant 1.000000e+00 : f32
    %252 = vector.broadcast %cst_55 : f32 to vector<2x32xf32>
    %253 = arith.addf %252, %251 : vector<2x32xf32>
    %254 = arith.divf %252, %253 : vector<2x32xf32>
    %255 = vector.extract_strided_slice %248 {offsets = [0, 32], sizes = [2, 32], strides = [1, 1]} : vector<2x160xf32> to vector<2x32xf32>
    %256 = arith.negf %255 : vector<2x32xf32>
    %257 = math.exp %256 : vector<2x32xf32>
    %cst_56 = arith.constant 1.000000e+00 : f32
    %258 = vector.broadcast %cst_56 : f32 to vector<2x32xf32>
    %259 = arith.addf %258, %257 : vector<2x32xf32>
    %260 = arith.divf %258, %259 : vector<2x32xf32>
    %261 = vector.extract_strided_slice %248 {offsets = [0, 64], sizes = [2, 32], strides = [1, 1]} : vector<2x160xf32> to vector<2x32xf32>
    %262 = arith.negf %261 : vector<2x32xf32>
    %263 = math.exp %262 : vector<2x32xf32>
    %cst_57 = arith.constant 1.000000e+00 : f32
    %264 = vector.broadcast %cst_57 : f32 to vector<2x32xf32>
    %265 = arith.addf %264, %263 : vector<2x32xf32>
    %266 = arith.divf %264, %265 : vector<2x32xf32>
    %267 = vector.extract_strided_slice %248 {offsets = [0, 96], sizes = [2, 32], strides = [1, 1]} : vector<2x160xf32> to vector<2x32xf32>
    %268 = math.tanh %267 : vector<2x32xf32>
    %269 = vector.extract_strided_slice %248 {offsets = [0, 128], sizes = [2, 32], strides = [1, 1]} : vector<2x160xf32> to vector<2x32xf32>
    %270 = arith.mulf %260, %208 : vector<2x32xf32>
    %271 = arith.mulf %254, %268 : vector<2x32xf32>
    %272 = arith.addf %270, %271 : vector<2x32xf32>
    %273 = math.tanh %272 : vector<2x32xf32>
    %274 = arith.addf %273, %269 : vector<2x32xf32>
    %275 = arith.mulf %266, %274 : vector<2x32xf32>
    %276 = tpu.concatenate %242, %239 in 1 : vector<2x32xf32>, vector<2x32xf32> -> vector<2x64xf32>
    %cst_58 = arith.constant dense<0.000000e+00> : vector<2x160xf32>
    %277 = tpu.matmul %276, %5, %cst_58 {dimension_numbers = #tpu.dot_dimension_numbers<[1], [0], [0], [1], [0, 0, 1, 1], [], []>} : vector<2x64xf32>, vector<64x160xf32>, vector<2x160xf32> -> vector<2x160xf32>
    %278 = vector.extract_strided_slice %15 {offsets = [8, 0], sizes = [2, 160], strides = [1, 1]} : vector<16x160xf32> to vector<2x160xf32>
    %279 = arith.addf %277, %278 : vector<2x160xf32>
    %280 = vector.extract_strided_slice %279 {offsets = [0, 0], sizes = [2, 32], strides = [1, 1]} : vector<2x160xf32> to vector<2x32xf32>
    %281 = arith.negf %280 : vector<2x32xf32>
    %282 = math.exp %281 : vector<2x32xf32>
    %cst_59 = arith.constant 1.000000e+00 : f32
    %283 = vector.broadcast %cst_59 : f32 to vector<2x32xf32>
    %284 = arith.addf %283, %282 : vector<2x32xf32>
    %285 = arith.divf %283, %284 : vector<2x32xf32>
    %286 = vector.extract_strided_slice %279 {offsets = [0, 32], sizes = [2, 32], strides = [1, 1]} : vector<2x160xf32> to vector<2x32xf32>
    %287 = arith.negf %286 : vector<2x32xf32>
    %288 = math.exp %287 : vector<2x32xf32>
    %cst_60 = arith.constant 1.000000e+00 : f32
    %289 = vector.broadcast %cst_60 : f32 to vector<2x32xf32>
    %290 = arith.addf %289, %288 : vector<2x32xf32>
    %291 = arith.divf %289, %290 : vector<2x32xf32>
    %292 = vector.extract_strided_slice %279 {offsets = [0, 64], sizes = [2, 32], strides = [1, 1]} : vector<2x160xf32> to vector<2x32xf32>
    %293 = arith.negf %292 : vector<2x32xf32>
    %294 = math.exp %293 : vector<2x32xf32>
    %cst_61 = arith.constant 1.000000e+00 : f32
    %295 = vector.broadcast %cst_61 : f32 to vector<2x32xf32>
    %296 = arith.addf %295, %294 : vector<2x32xf32>
    %297 = arith.divf %295, %296 : vector<2x32xf32>
    %298 = vector.extract_strided_slice %279 {offsets = [0, 96], sizes = [2, 32], strides = [1, 1]} : vector<2x160xf32> to vector<2x32xf32>
    %299 = math.tanh %298 : vector<2x32xf32>
    %300 = vector.extract_strided_slice %279 {offsets = [0, 128], sizes = [2, 32], strides = [1, 1]} : vector<2x160xf32> to vector<2x32xf32>
    %301 = arith.mulf %291, %239 : vector<2x32xf32>
    %302 = arith.mulf %285, %299 : vector<2x32xf32>
    %303 = arith.addf %301, %302 : vector<2x32xf32>
    %304 = math.tanh %303 : vector<2x32xf32>
    %305 = arith.addf %304, %300 : vector<2x32xf32>
    %306 = arith.mulf %297, %305 : vector<2x32xf32>
    %307 = tpu.concatenate %275, %272 in 1 : vector<2x32xf32>, vector<2x32xf32> -> vector<2x64xf32>
    %cst_62 = arith.constant dense<0.000000e+00> : vector<2x160xf32>
    %308 = tpu.matmul %307, %7, %cst_62 {dimension_numbers = #tpu.dot_dimension_numbers<[1], [0], [0], [1], [0, 0, 1, 1], [], []>} : vector<2x64xf32>, vector<64x160xf32>, vector<2x160xf32> -> vector<2x160xf32>
    %cst_63 = arith.constant dense<0.000000e+00> : vector<2x160xf32>
    %309 = tpu.matmul %306, %3, %cst_63 {dimension_numbers = #tpu.dot_dimension_numbers<[1], [0], [0], [1], [0, 0, 1, 1], [], []>} : vector<2x32xf32>, vector<32x160xf32>, vector<2x160xf32> -> vector<2x160xf32>
    %310 = arith.addf %308, %309 : vector<2x160xf32>
    %311 = vector.broadcast %11 : vector<1x160xf32> to vector<2x160xf32>
    %312 = arith.addf %310, %311 : vector<2x160xf32>
    %313 = vector.extract_strided_slice %312 {offsets = [0, 0], sizes = [2, 32], strides = [1, 1]} : vector<2x160xf32> to vector<2x32xf32>
    %314 = arith.negf %313 : vector<2x32xf32>
    %315 = math.exp %314 : vector<2x32xf32>
    %cst_64 = arith.constant 1.000000e+00 : f32
    %316 = vector.broadcast %cst_64 : f32 to vector<2x32xf32>
    %317 = arith.addf %316, %315 : vector<2x32xf32>
    %318 = arith.divf %316, %317 : vector<2x32xf32>
    %319 = vector.extract_strided_slice %312 {offsets = [0, 32], sizes = [2, 32], strides = [1, 1]} : vector<2x160xf32> to vector<2x32xf32>
    %320 = arith.negf %319 : vector<2x32xf32>
    %321 = math.exp %320 : vector<2x32xf32>
    %cst_65 = arith.constant 1.000000e+00 : f32
    %322 = vector.broadcast %cst_65 : f32 to vector<2x32xf32>
    %323 = arith.addf %322, %321 : vector<2x32xf32>
    %324 = arith.divf %322, %323 : vector<2x32xf32>
    %325 = vector.extract_strided_slice %312 {offsets = [0, 64], sizes = [2, 32], strides = [1, 1]} : vector<2x160xf32> to vector<2x32xf32>
    %326 = arith.negf %325 : vector<2x32xf32>
    %327 = math.exp %326 : vector<2x32xf32>
    %cst_66 = arith.constant 1.000000e+00 : f32
    %328 = vector.broadcast %cst_66 : f32 to vector<2x32xf32>
    %329 = arith.addf %328, %327 : vector<2x32xf32>
    %330 = arith.divf %328, %329 : vector<2x32xf32>
    %331 = vector.extract_strided_slice %312 {offsets = [0, 96], sizes = [2, 32], strides = [1, 1]} : vector<2x160xf32> to vector<2x32xf32>
    %332 = math.tanh %331 : vector<2x32xf32>
    %333 = vector.extract_strided_slice %312 {offsets = [0, 128], sizes = [2, 32], strides = [1, 1]} : vector<2x160xf32> to vector<2x32xf32>
    %334 = arith.mulf %324, %272 : vector<2x32xf32>
    %335 = arith.mulf %318, %332 : vector<2x32xf32>
    %336 = arith.addf %334, %335 : vector<2x32xf32>
    %337 = math.tanh %336 : vector<2x32xf32>
    %338 = arith.addf %337, %333 : vector<2x32xf32>
    %339 = arith.mulf %330, %338 : vector<2x32xf32>
    %340 = tpu.concatenate %306, %303 in 1 : vector<2x32xf32>, vector<2x32xf32> -> vector<2x64xf32>
    %cst_67 = arith.constant dense<0.000000e+00> : vector<2x160xf32>
    %341 = tpu.matmul %340, %5, %cst_67 {dimension_numbers = #tpu.dot_dimension_numbers<[1], [0], [0], [1], [0, 0, 1, 1], [], []>} : vector<2x64xf32>, vector<64x160xf32>, vector<2x160xf32> -> vector<2x160xf32>
    %342 = vector.extract_strided_slice %15 {offsets = [10, 0], sizes = [2, 160], strides = [1, 1]} : vector<16x160xf32> to vector<2x160xf32>
    %343 = arith.addf %341, %342 : vector<2x160xf32>
    %344 = vector.extract_strided_slice %343 {offsets = [0, 0], sizes = [2, 32], strides = [1, 1]} : vector<2x160xf32> to vector<2x32xf32>
    %345 = arith.negf %344 : vector<2x32xf32>
    %346 = math.exp %345 : vector<2x32xf32>
    %cst_68 = arith.constant 1.000000e+00 : f32
    %347 = vector.broadcast %cst_68 : f32 to vector<2x32xf32>
    %348 = arith.addf %347, %346 : vector<2x32xf32>
    %349 = arith.divf %347, %348 : vector<2x32xf32>
    %350 = vector.extract_strided_slice %343 {offsets = [0, 32], sizes = [2, 32], strides = [1, 1]} : vector<2x160xf32> to vector<2x32xf32>
    %351 = arith.negf %350 : vector<2x32xf32>
    %352 = math.exp %351 : vector<2x32xf32>
    %cst_69 = arith.constant 1.000000e+00 : f32
    %353 = vector.broadcast %cst_69 : f32 to vector<2x32xf32>
    %354 = arith.addf %353, %352 : vector<2x32xf32>
    %355 = arith.divf %353, %354 : vector<2x32xf32>
    %356 = vector.extract_strided_slice %343 {offsets = [0, 64], sizes = [2, 32], strides = [1, 1]} : vector<2x160xf32> to vector<2x32xf32>
    %357 = arith.negf %356 : vector<2x32xf32>
    %358 = math.exp %357 : vector<2x32xf32>
    %cst_70 = arith.constant 1.000000e+00 : f32
    %359 = vector.broadcast %cst_70 : f32 to vector<2x32xf32>
    %360 = arith.addf %359, %358 : vector<2x32xf32>
    %361 = arith.divf %359, %360 : vector<2x32xf32>
    %362 = vector.extract_strided_slice %343 {offsets = [0, 96], sizes = [2, 32], strides = [1, 1]} : vector<2x160xf32> to vector<2x32xf32>
    %363 = math.tanh %362 : vector<2x32xf32>
    %364 = vector.extract_strided_slice %343 {offsets = [0, 128], sizes = [2, 32], strides = [1, 1]} : vector<2x160xf32> to vector<2x32xf32>
    %365 = arith.mulf %355, %303 : vector<2x32xf32>
    %366 = arith.mulf %349, %363 : vector<2x32xf32>
    %367 = arith.addf %365, %366 : vector<2x32xf32>
    %368 = math.tanh %367 : vector<2x32xf32>
    %369 = arith.addf %368, %364 : vector<2x32xf32>
    %370 = arith.mulf %361, %369 : vector<2x32xf32>
    %371 = tpu.concatenate %339, %336 in 1 : vector<2x32xf32>, vector<2x32xf32> -> vector<2x64xf32>
    %cst_71 = arith.constant dense<0.000000e+00> : vector<2x160xf32>
    %372 = tpu.matmul %371, %7, %cst_71 {dimension_numbers = #tpu.dot_dimension_numbers<[1], [0], [0], [1], [0, 0, 1, 1], [], []>} : vector<2x64xf32>, vector<64x160xf32>, vector<2x160xf32> -> vector<2x160xf32>
    %cst_72 = arith.constant dense<0.000000e+00> : vector<2x160xf32>
    %373 = tpu.matmul %370, %3, %cst_72 {dimension_numbers = #tpu.dot_dimension_numbers<[1], [0], [0], [1], [0, 0, 1, 1], [], []>} : vector<2x32xf32>, vector<32x160xf32>, vector<2x160xf32> -> vector<2x160xf32>
    %374 = arith.addf %372, %373 : vector<2x160xf32>
    %375 = vector.broadcast %11 : vector<1x160xf32> to vector<2x160xf32>
    %376 = arith.addf %374, %375 : vector<2x160xf32>
    %377 = vector.extract_strided_slice %376 {offsets = [0, 0], sizes = [2, 32], strides = [1, 1]} : vector<2x160xf32> to vector<2x32xf32>
    %378 = arith.negf %377 : vector<2x32xf32>
    %379 = math.exp %378 : vector<2x32xf32>
    %cst_73 = arith.constant 1.000000e+00 : f32
    %380 = vector.broadcast %cst_73 : f32 to vector<2x32xf32>
    %381 = arith.addf %380, %379 : vector<2x32xf32>
    %382 = arith.divf %380, %381 : vector<2x32xf32>
    %383 = vector.extract_strided_slice %376 {offsets = [0, 32], sizes = [2, 32], strides = [1, 1]} : vector<2x160xf32> to vector<2x32xf32>
    %384 = arith.negf %383 : vector<2x32xf32>
    %385 = math.exp %384 : vector<2x32xf32>
    %cst_74 = arith.constant 1.000000e+00 : f32
    %386 = vector.broadcast %cst_74 : f32 to vector<2x32xf32>
    %387 = arith.addf %386, %385 : vector<2x32xf32>
    %388 = arith.divf %386, %387 : vector<2x32xf32>
    %389 = vector.extract_strided_slice %376 {offsets = [0, 64], sizes = [2, 32], strides = [1, 1]} : vector<2x160xf32> to vector<2x32xf32>
    %390 = arith.negf %389 : vector<2x32xf32>
    %391 = math.exp %390 : vector<2x32xf32>
    %cst_75 = arith.constant 1.000000e+00 : f32
    %392 = vector.broadcast %cst_75 : f32 to vector<2x32xf32>
    %393 = arith.addf %392, %391 : vector<2x32xf32>
    %394 = arith.divf %392, %393 : vector<2x32xf32>
    %395 = vector.extract_strided_slice %376 {offsets = [0, 96], sizes = [2, 32], strides = [1, 1]} : vector<2x160xf32> to vector<2x32xf32>
    %396 = math.tanh %395 : vector<2x32xf32>
    %397 = vector.extract_strided_slice %376 {offsets = [0, 128], sizes = [2, 32], strides = [1, 1]} : vector<2x160xf32> to vector<2x32xf32>
    %398 = arith.mulf %388, %336 : vector<2x32xf32>
    %399 = arith.mulf %382, %396 : vector<2x32xf32>
    %400 = arith.addf %398, %399 : vector<2x32xf32>
    %401 = math.tanh %400 : vector<2x32xf32>
    %402 = arith.addf %401, %397 : vector<2x32xf32>
    %403 = arith.mulf %394, %402 : vector<2x32xf32>
    %404 = tpu.concatenate %370, %367 in 1 : vector<2x32xf32>, vector<2x32xf32> -> vector<2x64xf32>
    %cst_76 = arith.constant dense<0.000000e+00> : vector<2x160xf32>
    %405 = tpu.matmul %404, %5, %cst_76 {dimension_numbers = #tpu.dot_dimension_numbers<[1], [0], [0], [1], [0, 0, 1, 1], [], []>} : vector<2x64xf32>, vector<64x160xf32>, vector<2x160xf32> -> vector<2x160xf32>
    %406 = vector.extract_strided_slice %15 {offsets = [12, 0], sizes = [2, 160], strides = [1, 1]} : vector<16x160xf32> to vector<2x160xf32>
    %407 = arith.addf %405, %406 : vector<2x160xf32>
    %408 = vector.extract_strided_slice %407 {offsets = [0, 0], sizes = [2, 32], strides = [1, 1]} : vector<2x160xf32> to vector<2x32xf32>
    %409 = arith.negf %408 : vector<2x32xf32>
    %410 = math.exp %409 : vector<2x32xf32>
    %cst_77 = arith.constant 1.000000e+00 : f32
    %411 = vector.broadcast %cst_77 : f32 to vector<2x32xf32>
    %412 = arith.addf %411, %410 : vector<2x32xf32>
    %413 = arith.divf %411, %412 : vector<2x32xf32>
    %414 = vector.extract_strided_slice %407 {offsets = [0, 32], sizes = [2, 32], strides = [1, 1]} : vector<2x160xf32> to vector<2x32xf32>
    %415 = arith.negf %414 : vector<2x32xf32>
    %416 = math.exp %415 : vector<2x32xf32>
    %cst_78 = arith.constant 1.000000e+00 : f32
    %417 = vector.broadcast %cst_78 : f32 to vector<2x32xf32>
    %418 = arith.addf %417, %416 : vector<2x32xf32>
    %419 = arith.divf %417, %418 : vector<2x32xf32>
    %420 = vector.extract_strided_slice %407 {offsets = [0, 64], sizes = [2, 32], strides = [1, 1]} : vector<2x160xf32> to vector<2x32xf32>
    %421 = arith.negf %420 : vector<2x32xf32>
    %422 = math.exp %421 : vector<2x32xf32>
    %cst_79 = arith.constant 1.000000e+00 : f32
    %423 = vector.broadcast %cst_79 : f32 to vector<2x32xf32>
    %424 = arith.addf %423, %422 : vector<2x32xf32>
    %425 = arith.divf %423, %424 : vector<2x32xf32>
    %426 = vector.extract_strided_slice %407 {offsets = [0, 96], sizes = [2, 32], strides = [1, 1]} : vector<2x160xf32> to vector<2x32xf32>
    %427 = math.tanh %426 : vector<2x32xf32>
    %428 = vector.extract_strided_slice %407 {offsets = [0, 128], sizes = [2, 32], strides = [1, 1]} : vector<2x160xf32> to vector<2x32xf32>
    %429 = arith.mulf %419, %367 : vector<2x32xf32>
    %430 = arith.mulf %413, %427 : vector<2x32xf32>
    %431 = arith.addf %429, %430 : vector<2x32xf32>
    %432 = math.tanh %431 : vector<2x32xf32>
    %433 = arith.addf %432, %428 : vector<2x32xf32>
    %434 = arith.mulf %425, %433 : vector<2x32xf32>
    %435 = tpu.concatenate %403, %400 in 1 : vector<2x32xf32>, vector<2x32xf32> -> vector<2x64xf32>
    %cst_80 = arith.constant dense<0.000000e+00> : vector<2x160xf32>
    %436 = tpu.matmul %435, %7, %cst_80 {dimension_numbers = #tpu.dot_dimension_numbers<[1], [0], [0], [1], [0, 0, 1, 1], [], []>} : vector<2x64xf32>, vector<64x160xf32>, vector<2x160xf32> -> vector<2x160xf32>
    %cst_81 = arith.constant dense<0.000000e+00> : vector<2x160xf32>
    %437 = tpu.matmul %434, %3, %cst_81 {dimension_numbers = #tpu.dot_dimension_numbers<[1], [0], [0], [1], [0, 0, 1, 1], [], []>} : vector<2x32xf32>, vector<32x160xf32>, vector<2x160xf32> -> vector<2x160xf32>
    %438 = arith.addf %436, %437 : vector<2x160xf32>
    %439 = vector.broadcast %11 : vector<1x160xf32> to vector<2x160xf32>
    %440 = arith.addf %438, %439 : vector<2x160xf32>
    %441 = vector.extract_strided_slice %440 {offsets = [0, 0], sizes = [2, 32], strides = [1, 1]} : vector<2x160xf32> to vector<2x32xf32>
    %442 = arith.negf %441 : vector<2x32xf32>
    %443 = math.exp %442 : vector<2x32xf32>
    %cst_82 = arith.constant 1.000000e+00 : f32
    %444 = vector.broadcast %cst_82 : f32 to vector<2x32xf32>
    %445 = arith.addf %444, %443 : vector<2x32xf32>
    %446 = arith.divf %444, %445 : vector<2x32xf32>
    %447 = vector.extract_strided_slice %440 {offsets = [0, 32], sizes = [2, 32], strides = [1, 1]} : vector<2x160xf32> to vector<2x32xf32>
    %448 = arith.negf %447 : vector<2x32xf32>
    %449 = math.exp %448 : vector<2x32xf32>
    %cst_83 = arith.constant 1.000000e+00 : f32
    %450 = vector.broadcast %cst_83 : f32 to vector<2x32xf32>
    %451 = arith.addf %450, %449 : vector<2x32xf32>
    %452 = arith.divf %450, %451 : vector<2x32xf32>
    %453 = vector.extract_strided_slice %440 {offsets = [0, 64], sizes = [2, 32], strides = [1, 1]} : vector<2x160xf32> to vector<2x32xf32>
    %454 = arith.negf %453 : vector<2x32xf32>
    %455 = math.exp %454 : vector<2x32xf32>
    %cst_84 = arith.constant 1.000000e+00 : f32
    %456 = vector.broadcast %cst_84 : f32 to vector<2x32xf32>
    %457 = arith.addf %456, %455 : vector<2x32xf32>
    %458 = arith.divf %456, %457 : vector<2x32xf32>
    %459 = vector.extract_strided_slice %440 {offsets = [0, 96], sizes = [2, 32], strides = [1, 1]} : vector<2x160xf32> to vector<2x32xf32>
    %460 = math.tanh %459 : vector<2x32xf32>
    %461 = vector.extract_strided_slice %440 {offsets = [0, 128], sizes = [2, 32], strides = [1, 1]} : vector<2x160xf32> to vector<2x32xf32>
    %462 = arith.mulf %452, %400 : vector<2x32xf32>
    %463 = arith.mulf %446, %460 : vector<2x32xf32>
    %464 = arith.addf %462, %463 : vector<2x32xf32>
    %465 = math.tanh %464 : vector<2x32xf32>
    %466 = arith.addf %465, %461 : vector<2x32xf32>
    %467 = arith.mulf %458, %466 : vector<2x32xf32>
    %468 = tpu.concatenate %434, %431 in 1 : vector<2x32xf32>, vector<2x32xf32> -> vector<2x64xf32>
    %cst_85 = arith.constant dense<0.000000e+00> : vector<2x160xf32>
    %469 = tpu.matmul %468, %5, %cst_85 {dimension_numbers = #tpu.dot_dimension_numbers<[1], [0], [0], [1], [0, 0, 1, 1], [], []>} : vector<2x64xf32>, vector<64x160xf32>, vector<2x160xf32> -> vector<2x160xf32>
    %470 = vector.extract_strided_slice %15 {offsets = [14, 0], sizes = [2, 160], strides = [1, 1]} : vector<16x160xf32> to vector<2x160xf32>
    %471 = arith.addf %469, %470 : vector<2x160xf32>
    %472 = vector.extract_strided_slice %471 {offsets = [0, 0], sizes = [2, 32], strides = [1, 1]} : vector<2x160xf32> to vector<2x32xf32>
    %473 = arith.negf %472 : vector<2x32xf32>
    %474 = math.exp %473 : vector<2x32xf32>
    %cst_86 = arith.constant 1.000000e+00 : f32
    %475 = vector.broadcast %cst_86 : f32 to vector<2x32xf32>
    %476 = arith.addf %475, %474 : vector<2x32xf32>
    %477 = arith.divf %475, %476 : vector<2x32xf32>
    %478 = vector.extract_strided_slice %471 {offsets = [0, 32], sizes = [2, 32], strides = [1, 1]} : vector<2x160xf32> to vector<2x32xf32>
    %479 = arith.negf %478 : vector<2x32xf32>
    %480 = math.exp %479 : vector<2x32xf32>
    %cst_87 = arith.constant 1.000000e+00 : f32
    %481 = vector.broadcast %cst_87 : f32 to vector<2x32xf32>
    %482 = arith.addf %481, %480 : vector<2x32xf32>
    %483 = arith.divf %481, %482 : vector<2x32xf32>
    %484 = vector.extract_strided_slice %471 {offsets = [0, 64], sizes = [2, 32], strides = [1, 1]} : vector<2x160xf32> to vector<2x32xf32>
    %485 = arith.negf %484 : vector<2x32xf32>
    %486 = math.exp %485 : vector<2x32xf32>
    %cst_88 = arith.constant 1.000000e+00 : f32
    %487 = vector.broadcast %cst_88 : f32 to vector<2x32xf32>
    %488 = arith.addf %487, %486 : vector<2x32xf32>
    %489 = arith.divf %487, %488 : vector<2x32xf32>
    %490 = vector.extract_strided_slice %471 {offsets = [0, 96], sizes = [2, 32], strides = [1, 1]} : vector<2x160xf32> to vector<2x32xf32>
    %491 = math.tanh %490 : vector<2x32xf32>
    %492 = vector.extract_strided_slice %471 {offsets = [0, 128], sizes = [2, 32], strides = [1, 1]} : vector<2x160xf32> to vector<2x32xf32>
    %493 = arith.mulf %483, %431 : vector<2x32xf32>
    %494 = arith.mulf %477, %491 : vector<2x32xf32>
    %495 = arith.addf %493, %494 : vector<2x32xf32>
    %496 = math.tanh %495 : vector<2x32xf32>
    %497 = arith.addf %496, %492 : vector<2x32xf32>
    %498 = arith.mulf %489, %497 : vector<2x32xf32>
    %499 = tpu.concatenate %467, %464 in 1 : vector<2x32xf32>, vector<2x32xf32> -> vector<2x64xf32>
    %cst_89 = arith.constant dense<0.000000e+00> : vector<2x160xf32>
    %500 = tpu.matmul %499, %7, %cst_89 {dimension_numbers = #tpu.dot_dimension_numbers<[1], [0], [0], [1], [0, 0, 1, 1], [], []>} : vector<2x64xf32>, vector<64x160xf32>, vector<2x160xf32> -> vector<2x160xf32>
    %cst_90 = arith.constant dense<0.000000e+00> : vector<2x160xf32>
    %501 = tpu.matmul %498, %3, %cst_90 {dimension_numbers = #tpu.dot_dimension_numbers<[1], [0], [0], [1], [0, 0, 1, 1], [], []>} : vector<2x32xf32>, vector<32x160xf32>, vector<2x160xf32> -> vector<2x160xf32>
    %502 = arith.addf %500, %501 : vector<2x160xf32>
    %503 = vector.broadcast %11 : vector<1x160xf32> to vector<2x160xf32>
    %504 = arith.addf %502, %503 : vector<2x160xf32>
    %505 = vector.extract_strided_slice %504 {offsets = [0, 0], sizes = [2, 32], strides = [1, 1]} : vector<2x160xf32> to vector<2x32xf32>
    %506 = arith.negf %505 : vector<2x32xf32>
    %507 = math.exp %506 : vector<2x32xf32>
    %cst_91 = arith.constant 1.000000e+00 : f32
    %508 = vector.broadcast %cst_91 : f32 to vector<2x32xf32>
    %509 = arith.addf %508, %507 : vector<2x32xf32>
    %510 = arith.divf %508, %509 : vector<2x32xf32>
    %511 = vector.extract_strided_slice %504 {offsets = [0, 32], sizes = [2, 32], strides = [1, 1]} : vector<2x160xf32> to vector<2x32xf32>
    %512 = arith.negf %511 : vector<2x32xf32>
    %513 = math.exp %512 : vector<2x32xf32>
    %cst_92 = arith.constant 1.000000e+00 : f32
    %514 = vector.broadcast %cst_92 : f32 to vector<2x32xf32>
    %515 = arith.addf %514, %513 : vector<2x32xf32>
    %516 = arith.divf %514, %515 : vector<2x32xf32>
    %517 = vector.extract_strided_slice %504 {offsets = [0, 64], sizes = [2, 32], strides = [1, 1]} : vector<2x160xf32> to vector<2x32xf32>
    %518 = arith.negf %517 : vector<2x32xf32>
    %519 = math.exp %518 : vector<2x32xf32>
    %cst_93 = arith.constant 1.000000e+00 : f32
    %520 = vector.broadcast %cst_93 : f32 to vector<2x32xf32>
    %521 = arith.addf %520, %519 : vector<2x32xf32>
    %522 = arith.divf %520, %521 : vector<2x32xf32>
    %523 = vector.extract_strided_slice %504 {offsets = [0, 96], sizes = [2, 32], strides = [1, 1]} : vector<2x160xf32> to vector<2x32xf32>
    %524 = math.tanh %523 : vector<2x32xf32>
    %525 = vector.extract_strided_slice %504 {offsets = [0, 128], sizes = [2, 32], strides = [1, 1]} : vector<2x160xf32> to vector<2x32xf32>
    %526 = arith.mulf %516, %464 : vector<2x32xf32>
    %527 = arith.mulf %510, %524 : vector<2x32xf32>
    %528 = arith.addf %526, %527 : vector<2x32xf32>
    %529 = math.tanh %528 : vector<2x32xf32>
    %530 = arith.addf %529, %525 : vector<2x32xf32>
    %531 = arith.mulf %522, %530 : vector<2x32xf32>
    %c0_94 = arith.constant 0 : index
    %c0_95 = arith.constant 0 : index
    %532 = vector.load %arg4[%c0_94, %c0_95] : memref<32x16xf32, #tpu.memory_space<vmem>>, vector<32x16xf32>
    %cst_96 = arith.constant dense<0.000000e+00> : vector<2x16xf32>
    %533 = tpu.matmul %531, %532, %cst_96 {dimension_numbers = #tpu.dot_dimension_numbers<[1], [0], [0], [1], [0, 0, 1, 1], [], []>} : vector<2x32xf32>, vector<32x16xf32>, vector<2x16xf32> -> vector<2x16xf32>
    %c0_97 = arith.constant 0 : index
    %c0_98 = arith.constant 0 : index
    %534 = vector.load %arg5[%c0_97, %c0_98] : memref<1x16xf32, #tpu.memory_space<vmem>>, vector<1x16xf32>
    %535 = vector.broadcast %534 : vector<1x16xf32> to vector<2x16xf32>
    %536 = arith.addf %533, %535 : vector<2x16xf32>
    %cst_99 = arith.constant 0.000000e+00 : f32
    %537 = vector.broadcast %cst_99 : f32 to vector<2x16xf32>
    %538 = arith.maximumf %536, %537 : vector<2x16xf32>
    %c0_100 = arith.constant 0 : index
    %c0_101 = arith.constant 0 : index
    %539 = vector.load %arg6[%c0_100, %c0_101] : memref<16x4xf32, #tpu.memory_space<vmem>>, vector<16x4xf32>
    %cst_102 = arith.constant dense<0.000000e+00> : vector<2x4xf32>
    %540 = tpu.matmul %538, %539, %cst_102 {dimension_numbers = #tpu.dot_dimension_numbers<[1], [0], [0], [1], [0, 0, 1, 1], [], []>} : vector<2x16xf32>, vector<16x4xf32>, vector<2x4xf32> -> vector<2x4xf32>
    %c0_103 = arith.constant 0 : index
    %c0_104 = arith.constant 0 : index
    %541 = vector.load %arg7[%c0_103, %c0_104] : memref<1x4xf32, #tpu.memory_space<vmem>>, vector<1x4xf32>
    %542 = vector.broadcast %541 : vector<1x4xf32> to vector<2x4xf32>
    %543 = arith.addf %540, %542 : vector<2x4xf32>
    %c0_105 = arith.constant 0 : index
    %c0_106 = arith.constant 0 : index
    %544 = vector.load %arg8[%c0_105, %c0_106] : memref<2x4xf32, #tpu.memory_space<vmem>>, vector<2x4xf32>
    tpu.vector_store %arg8[%c0_105, %c0_106], %543 {strides = array<i32>} : memref<2x4xf32, #tpu.memory_space<vmem>>, vector<2x4xf32>,
    return
  }
}

</mosaic_0001>

<bundles_post_ra>
// kernel: tpu_custom_call.1
= control target key start
LH: loop header
LB: loop body
LE: loop exit
PB: predicated region body
PF: predicated region fallthrough
CT: control target
= control target key end

     0   :  { %13 = vsyncpa [#allocation3], 0  ;;  %s3939_s0 = inlined_call_operand.vmem [shape: f32[16,32], index: 0, kind: input, shape index: {}]   ;;  %s3940_s1 = inlined_call_operand.hbm [shape: f32[2,32,160], index: 1, kind: input, shape index: {}]   ;;  %s3941_s2 = inlined_call_operand.hbm [shape: f32[2,64,160], index: 2, kind: input, shape index: {}]   ;;  %s3942_s3 = inlined_call_operand.vmem [shape: f32[2,1,160], index: 3, kind: input, shape index: {}]   ;;  %s3943_s4 = inlined_call_operand.vmem [shape: f32[32,16], index: 4, kind: input, shape index: {}]   ;;  %s3944_s5 = inlined_call_operand.vmem [shape: f32[1,16], index: 5, kind: input, shape index: {}]   ;;  %s3945_s6 = inlined_call_operand.vmem [shape: f32[16,4], index: 6, kind: input, shape index: {}]   ;;  %s3946_s7 = inlined_call_operand.vmem [shape: f32[1,4], index: 7, kind: input, shape index: {}]   ;;  %s3947_s8 = inlined_call_operand.hbm [shape: f32[2,4], index: 8, kind: output, shape index: {}]  }
   0x1   :  { %14 = vsyncpa [#allocation6], 0 }
   0x2   :  { %15 = vsyncpa [#allocation4], 0  ;;  %s3068_s27 = smov [#allocation2]  }
   0x3   :  { %s23_s28 = sshll.u32 %s3068_s27, 4  ;;  %s24_s28 = int_to_ptr.vmem [resolvable:$true] %s23_s28 }
   0x4   :  { %s3010_s29 = scalar_lea.vmem %s24_s28, 2048  ;;  %p3015_p1 = scmp.lt.s32.totalorder %s24_s28, %s24_s28 }
   0x5   :  { %p3011_p0 = scmp.ne.s32.totalorder %s24_s28, %s3010_s29  ;;  %p3016_p2 = scmp.lt.s32.totalorder %s3010_s29, %s3010_s29 }
   0x7   :  { %p3017_p3 = por %p3016_p2, %p3015_p1 }
   0x9   :  { %p3018_p4 = pnand %p3017_p3, %p3011_p0 }
   0xb   :  { %3021 = shalt.err (!%p3018_p4)
}
   0xc   :  { %s3069_s30 = smov 256   ;;  %s3070_s9 = smov 16  }
   0xd   :  { %29 = dma.hbm_to_vmem [thread:$0]  %s3940_s1, 2048, %s24_s28, [#allocation3], %s3069_s30, %s3069_s30, %s3070_s9  }
   0xe   :  { %s3071_s12 = smov [#allocation5]  }
   0xf   :  { %s35_s13 = sshll.u32 %s3071_s12, 4  ;;  %s36_s13 = int_to_ptr.vmem [resolvable:$true] %s35_s13 }
  0x10   :  { %s3030_s14 = scalar_lea.vmem %s36_s13, 4096  ;;  %p3035_p6 = scmp.lt.s32.totalorder %s36_s13, %s36_s13 }
  0x11   :  { %p3031_p5 = scmp.ne.s32.totalorder %s36_s13, %s3030_s14  ;;  %p3036_p7 = scmp.lt.s32.totalorder %s3030_s14, %s3030_s14 }
  0x13   :  { %p3037_p8 = por %p3036_p7, %p3035_p6 }
  0x15   :  { %p3038_p9 = pnand %p3037_p8, %p3031_p5 }
  0x17   :  { %3041 = shalt.err (!%p3038_p9)
}
  0x18   :  { %41 = dma.hbm_to_vmem [thread:$0]  %s3941_s2, 4096, %s36_s13, [#allocation6], %s3069_s30, %s3069_s30, %s3070_s9  }
  0x19   :  { %3062 = dma.done.wait [#allocation3], 2048  }
  0x1a   :  { %3063 = vsyncadd [#allocation3], 4294965248 }
  0x1b   :  { %3064 = dma.done.wait [#allocation6], 4096  }
  0x1c   :  { %3065 = vsyncadd [#allocation6], 4294963200  ;;  %v3948_v0 = vmov 0.0   ;;  %v3130_v1 = vld [vmem:[#allocation5 + $0x78] sm:$0xff]  ;;  %v3132_v2 = vld [vmem:[#allocation5 + $0x70] sm:$0xff]  ;;  %vm124_vm0 = vcmask 261120   ;;  %v114_v26 = vlaneseq }
  0x1d   :  { %195 = vmatprep.mubr.f32.mxu0 %v3948_v0  ;;  %276 = vmatprep.mubr.f32.mxu1 %v3948_v0  ;;  %v3134_v3 = vld [vmem:[#allocation5 + $0x68] sm:$0xff]  ;;  %v3137_v4 = vld [vmem:[#allocation5 + $0x60] sm:$0xff]  ;;  %v65_v5 = vld [vmem:[#allocation2 + $0x38] sm:$0xff]  ;;  %vm208_vm1 = vcmask 523264   ;;  %vm3075_vm2 = vmmov 0   ;;  %vm2662_vm3 = vcmask 130048  }
  0x1e   :  { %228 = vmatprep.subr.mxu1 %v3130_v1  ;;  %155 = vmatprep.subr.mxu0 %v65_v5  ;;  %v3140_v6 = vld [vmem:[#allocation5 + $0x58] sm:$0xff]  ;;  %v64_v7 = vld [vmem:[#allocation2 + $0x30] sm:$0xff]  ;;  %v63_v8 = vld [vmem:[#allocation2 + $0x28] sm:$0xff]  ;;  %v3201_v27 = vshrl.u32 %v114_v26, 7  ;;  %s3076_s16 = smov [#allocation7]   ;;  %vm2736_vm4 = vcmask 25600  }
  0x1f   :  { %229 = vmatpush1.msra.mxu1 %v3132_v2  ;;  %156 = vmatpush1.msra.mxu0 %v64_v7  ;;  %v3143_v9 = vld [vmem:[#allocation5 + $0x50] sm:$0xff]  ;;  %v62_v10 = vld [vmem:[#allocation2 + $0x20] sm:$0xff]  ;;  %v3146_v11 = vld [vmem:[#allocation5 + $0x48] sm:$0xff]  ;;  %s2744_s1 = sshll.u32 %s3076_s16, 4  ;;  %s2745_s1 = int_to_ptr.vmem [resolvable:$true] %s2744_s1 }
  0x20   :  { %230 = vmatprep.subr.mxu1 %v3134_v3  ;;  %157 = vmatprep.subr.mxu0 %v63_v8  ;;  %v61_v12 = vld [vmem:[#allocation2 + $0x18] sm:$0xff]  ;;  %v60_v13 = vld [vmem:[#allocation2 + $0x10] sm:$0xff]  ;;  %v3149_v14 = vld [vmem:[#allocation5 + $0x40] sm:$0xff]  ;;  %v120_v28 = vsub.s32 1, %v3201_v27  ;;  %v116_v31 = vsub.s32 0, %v3201_v27  ;;  %p3047_p11 = scmp.lt.s32.totalorder %s2745_s1, %s2745_s1 }
  0x21   :  { %231 = vmatpush1.msra.mxu1 %v3137_v4  ;;  %158 = vmatpush1.msra.mxu0 %v62_v10  ;;  %v59_v15 = vld [vmem:[#allocation2 + $0x8] sm:$0xff]  ;;  %v3152_v16 = vld [vmem:[#allocation5 + $0x38] sm:$0xff]  ;;  %v58_v17 = vld [vmem:[#allocation2] sm:$0xff] }
  0x22   :  { %232 = vmatprep.subr.mxu1 %v3140_v6  ;;  %159 = vmatprep.subr.mxu0 %v61_v12  ;;  %v3155_v18 = vld [vmem:[#allocation5 + $0x30] sm:$0xff]  ;;  %v111_v19 = vld [vmem:[%s3939_s0] sm:$0xff]  ;;  %v3161_v20 = vld [vmem:[#allocation5 + $0x28] sm:$0xff] }
  0x23   :  { %233 = vmatpush1.msra.mxu1 %v3143_v9  ;;  %160 = vmatpush1.msra.mxu0 %v60_v13  ;;  %v3164_v21 = vld [vmem:[#allocation5 + $0x20] sm:$0xff]  ;;  %v3168_v22 = vld [vmem:[#allocation5 + $0x18] sm:$0xff]  ;;  %v3171_v23 = vld [vmem:[#allocation5 + $0x10] sm:$0xff] }
  0x24   :  { %234 = vmatprep.subr.mxu1 %v3146_v11  ;;  %161 = vmatprep.subr.mxu0 %v59_v15  ;;  %v3175_v24 = vld [vmem:[#allocation5 + $0x8] sm:$0xff]  ;;  %v3178_v25 = vld [vmem:[#allocation5] sm:$0xff]  ;;  %v3236_v53 = vld [vmem:[#allocation2 + $0x78] sm:$0xff] }
  0x25   :  { %235 = vmatpush1.msra.mxu1 %v3149_v14  ;;  %162 = vmatpush1.msra.mxu0 %v58_v17  ;;  %v3207_v29 = vld [vmem:[%s3942_s3 + $0x2] sm:$0x3]  ;;  %v108_v32 = vld [vmem:[%s3942_s3] sm:$0x3]  ;;  %s3073_s3 = smov 32   ;;  %v3238_v54 = vld [vmem:[#allocation2 + $0x70] sm:$0xff] }
  0x26   :  { %236 = vmatprep.subr.mxu1 %v3152_v16  ;;  %2755 = vmatmul.mubr.msk.f32.vlgmr.msra.gmra.mxu0 %vm124_vm0, %v111_v19  ;;  %v3210_v30 = vrot.slane %v3207_v29, %v120_v28  ;;  %v3218_v33 = vrot.slane %v108_v32, %v116_v31  ;;  %v3223_v36 = vrot.slane %v108_v32, %v120_v28  ;;  %v3240_v55 = vld [vmem:[#allocation2 + $0x68] sm:$0xff]  ;;  %v3243_v56 = vld [vmem:[#allocation2 + $0x60] sm:$0xff]  ;;  %v3249_v58 = vld [vmem:[#allocation2 + $0x58] sm:$0xff] }
  0x27   :  { %237 = vmatpush1.msra.mxu1 %v3155_v18  ;;  %201 = vmatprep.mubr.f32.mxu0 %v3948_v0  ;;  %v112_v57 = vld [vmem:[%s3939_s0 + $0x8] sm:$0xff]  ;;  %v3253_v59 = vld [vmem:[#allocation2 + $0x50] sm:$0xff]  ;;  %v3259_v61 = vld [vmem:[#allocation5 + $0xf8] sm:$0xff]  ;;  %s3074_s0 = smov 64  }
  0x28   :  { %238 = vmatprep.subr.mxu1 %v3161_v20  ;;  %3952 = vst [vmem:[#allocation11_spill] sm:$0xff] %v3218_v33  ;;  %3953 = vst [vmem:[#allocation12_spill] sm:$0xff] %v3223_v36  ;;  %341 = vmatprep.subr.mxu0 %v3236_v53  ;;  %v3256_v60 = vld [vmem:[#allocation2 + $0x48] sm:$0xff]  ;;  %v3262_v62 = vld [vmem:[#allocation2 + $0x40] sm:$0xff] }
  0x29   :  { %239 = vmatpush1.msra.mxu1 %v3164_v21  ;;  %342 = vmatpush1.msra.mxu0 %v3238_v54  ;;  %v3271_v12 = vld [vmem:[#allocation5 + $0xf0] sm:$0xff]  ;;  %v3273_v15 = vld [vmem:[#allocation5 + $0xe8] sm:$0xff]  ;;  %v3278_v19 = vld [vmem:[#allocation5 + $0xe0] sm:$0xff] }
  0x2a   :  { %240 = vmatprep.subr.mxu1 %v3168_v22  ;;  %343 = vmatprep.subr.mxu0 %v3240_v55  ;;  %v3282_v26 = vld [vmem:[#allocation5 + $0xd8] sm:$0xff]  ;;  %v3285_v28 = vld [vmem:[#allocation5 + $0xd0] sm:$0xff]  ;;  %v3289_v32 = vld [vmem:[#allocation5 + $0xc8] sm:$0xff] }
  0x2b   :  { %241 = vmatpush1.msra.mxu1 %v3171_v23  ;;  %2756 = vmatmul.mubr.msk.f32.gmra.mxu0 %vm124_vm0, %v112_v57 }
  0x2c   :  { %242 = vmatprep.subr.mxu1 %v3175_v24  ;;  %344 = vmatpush1.msra.mxu0 %v3243_v56 }
  0x2d   :  { %243 = vmatpush1.msra.mxu1 %v3178_v25  ;;  %381 = vmatprep.mubr.f32.mxu0 %v3948_v0 }
  0x2e   :  { %277 = vmatmul.mubr.f32.vlgmr.msra.gmra.mxu1 %v3948_v0  ;;  %528 = vmatprep.subr.mxu1 %v3130_v1 }
  0x2f   :  { %529 = vmatpush1.msra.mxu1 %v3132_v2  ;;  %576 = vmatprep.mubr.f32.mxu1 %v3948_v0 }
  0x30   :  { %530 = vmatprep.subr.mxu1 %v3134_v3  ;;  %345 = vmatprep.subr.mxu0 %v3249_v58 }
  0x31   :  { %531 = vmatpush1.msra.mxu1 %v3137_v4  ;;  %346 = vmatpush1.msra.mxu0 %v3253_v59 }
  0x32   :  { %532 = vmatprep.subr.mxu1 %v3140_v6  ;;  %347 = vmatprep.subr.mxu0 %v3256_v60 }
  0x33   :  { %533 = vmatpush1.msra.mxu1 %v3143_v9  ;;  %348 = vmatpush1.msra.mxu0 %v3262_v62 }
  0x34   :  { %534 = vmatprep.subr.mxu1 %v3146_v11  ;;  %404 = vmatprep.subr.mxu0 %v3259_v61 }
  0x35   :  { %535 = vmatpush1.msra.mxu1 %v3149_v14 }
  0x36   :  { %536 = vmatprep.subr.mxu1 %v3152_v16 }
  0x37   :  { %537 = vmatpush1.msra.mxu1 %v3155_v18 }
  0x38   :  { %538 = vmatprep.subr.mxu1 %v3161_v20 }
  0x39   :  { %539 = vmatpush1.msra.mxu1 %v3164_v21 }
  0x3a   :  { %540 = vmatprep.subr.mxu1 %v3168_v22 }
  0x3b   :  { %541 = vmatpush1.msra.mxu1 %v3171_v23 }
  0x3c   :  { %542 = vmatprep.subr.mxu1 %v3175_v24 }
  0x3d   :  { %543 = vmatpush1.msra.mxu1 %v3178_v25 }
  0x3e   :  { %712 = vmatprep.subr.mxu1 %v3259_v61 }
  0xe6   :  { %v197_v34 = vpop.f32.mrf.mxu0 }
  0xe7   :  { %v3221_v35 = vadd.f32 %v197_v34, %v3218_v33  ;;  %v3293_v34 = vld [vmem:[#allocation5 + $0xc0] sm:$0xff] }
  0xe8   :  { %v199_v37 = vpop.f32.mrf.mxu0 }
  0xe9   :  { %v3226_v39 = vadd.f32 %v199_v37, %v3223_v36  ;;  %v3297_v37 = vld [vmem:[#allocation5 + $0xb8] sm:$0xff] }
  0xee   :  { %v278_v38 = vpop.f32.mrf.mxu1 }
  0xef   :  { %v279_v40 = vadd.f32 %v278_v38, %v3221_v35  ;;  %v3301_v38 = vld [vmem:[#allocation5 + $0xb0] sm:$0xff] }
  0xf0   :  { %v280_v41 = vpop.f32.mrf.mxu1 }
  0xf1   :  { %2834 = vtanh.f32 %v279_v40  ;;  %v281_v42 = vadd.f32 %v280_v41, %v3226_v39  ;;  %v2757_v44 = vmul.f32 -1.442695, %v279_v40  ;;  %v3305_v40 = vld [vmem:[#allocation5 + $0xa8] sm:$0xff]  ;;  %v3309_v41 = vld [vmem:[#allocation5 + $0xa0] sm:$0xff] }
  0xf3   :  { %303 = vrot.lane.b32.xlu1 %v281_v42, %s3073_s3  ;;  %2836 = vpow2.f32 %v2757_v44  ;;  %v3313_v42 = vld [vmem:[#allocation5 + $0x98] sm:$0xff]  ;;  %v3321_v44 = vld [vmem:[#allocation5 + $0x88] sm:$0xff] }
  0xfe   :  { %v2835_v43 = vpop.eup %2834 }
  0xff   :  { %292 = vrot.lane.b32.xlu0 %v2835_v43, %s3073_s3  ;;  %v3317_v43 = vld [vmem:[#allocation5 + $0x90] sm:$0xff] }
 0x100   :  { %v2837_v45 = vpop.eup %2836 }
 0x101   :  { %v286_v46 = vadd.f32 1.0, %v2837_v45  ;;  %v3325_v45 = vld [vmem:[#allocation5 + $0x80] sm:$0xff] }
 0x103   :  { %2838 = vrcp.f32 %v286_v46  ;;  %v505_v46 = vrot.slane %v3221_v35, 2 }
 0x110   :  { %v2839_v47 = vpop.eup %2838 }
 0x111   :  { %v290_v50 = vmul.f32 0.0, %v2839_v47 }
 0x165   :  { %v304_v5 = vpop.permute.xlu1 %303 }
 0x171   :  { %v293_v48 = vpop.permute.xlu0 %292 }
 0x172   :  { %v295_v49 = vmul.f32 %v2839_v47, %v293_v48  ;;  %v3350_v48 = vpop.f32.mrf.mxu0 }
 0x173   :  { %3954 = vst [vmem:[#allocation13_spill] sm:$0xff] %v3350_v48 }
 0x174   :  { %297 = vrot.lane.b32.xlu0 %v295_v49, %s3073_s3 }
 0x1e6   :  { %v298_v51 = vpop.permute.xlu0 %297 }
 0x1e7   :  { %v3233_v52 = vadd.f32 %v298_v51, %v290_v50  ;;  %v3352_v50 = vpop.f32.mrf.mxu0 }
 0x1e8   :  { %3955 = vst [vmem:[#allocation14_spill] sm:$0xff] %v3352_v50 }
 0x1e9   :  { %2840 = vtanh.f32 %v3233_v52 }
 0x1f6   :  { %v2841_v63 = vpop.eup %2840 }
 0x1f7   :  { %v306_v7 = vadd.f32 %v2841_v63, %v304_v5  ;;  %v3357_v63 = vrot.slane %v3207_v29, %v116_v31 }
 0x1f9   :  { %308 = vrot.lane.b32.xlu1 %v306_v7, %s3073_s3 }
 0x26b   :  { %v309_v8 = vpop.permute.xlu1 %308 }
 0x26c   :  { %v311_v10 = vmul.f32 %v2839_v47, %v309_v8 }
 0x26e   :  { %313 = vrot.lane.b32.xlu0 %v311_v10, %s3074_s0 }
 0x2e0   :  { %v314_v13 = vpop.permute.xlu0 %313 }
 0x2e1   :  { %v502_v17 = vsel %vm124_vm0, %v314_v13, %v3233_v52  ;;  %2758 = vmatmul.mubr.msk.f32.vlgmr.msra.gmra.mxu0 %vm124_vm0, %v314_v13 }
 0x2e2   :  { %405 = vmatpush1.msra.mxu0 %v3271_v12  ;;  %2760 = vmatmul.mubr.msk.f32.vlgmr.msra.gmra.mxu1 %vm208_vm1, %v502_v17 }
 0x2e3   :  { %406 = vmatprep.subr.mxu0 %v3273_v15  ;;  %452 = vmatprep.mubr.f32.mxu0 %v3948_v0 }
 0x2e4   :  { %407 = vmatpush1.msra.mxu0 %v3278_v19  ;;  %713 = vmatpush1.msra.mxu1 %v3271_v12 }
 0x2e5   :  { %408 = vmatprep.subr.mxu0 %v3282_v26  ;;  %714 = vmatprep.subr.mxu1 %v3273_v15 }
 0x2e6   :  { %409 = vmatpush1.msra.mxu0 %v3285_v28  ;;  %715 = vmatpush1.msra.mxu1 %v3278_v19 }
 0x2e7   :  { %410 = vmatprep.subr.mxu0 %v3289_v32  ;;  %716 = vmatprep.subr.mxu1 %v3282_v26 }
 0x2e8   :  { %411 = vmatpush1.msra.mxu0 %v3293_v34  ;;  %717 = vmatpush1.msra.mxu1 %v3285_v28 }
 0x2e9   :  { %412 = vmatprep.subr.mxu0 %v3297_v37  ;;  %718 = vmatprep.subr.mxu1 %v3289_v32 }
 0x2ea   :  { %413 = vmatpush1.msra.mxu0 %v3301_v38  ;;  %719 = vmatpush1.msra.mxu1 %v3293_v34 }
 0x2eb   :  { %414 = vmatprep.subr.mxu0 %v3305_v40  ;;  %720 = vmatprep.subr.mxu1 %v3297_v37 }
 0x2ec   :  { %415 = vmatpush1.msra.mxu0 %v3309_v41  ;;  %721 = vmatpush1.msra.mxu1 %v3301_v38 }
 0x2ed   :  { %416 = vmatprep.subr.mxu0 %v3313_v42  ;;  %722 = vmatprep.subr.mxu1 %v3305_v40 }
 0x2ee   :  { %417 = vmatpush1.msra.mxu0 %v3317_v43  ;;  %723 = vmatpush1.msra.mxu1 %v3309_v41 }
 0x2ef   :  { %418 = vmatprep.subr.mxu0 %v3321_v44  ;;  %724 = vmatprep.subr.mxu1 %v3313_v42 }
 0x2f0   :  { %419 = vmatpush1.msra.mxu0 %v3325_v45  ;;  %725 = vmatpush1.msra.mxu1 %v3317_v43 }
 0x2f1   :  { %453 = vmatmul.mubr.f32.vlgmr.msra.gmra.mxu0 %v3948_v0  ;;  %646 = vmatprep.subr.mxu0 %v3236_v53 }
 0x2f2   :  { %647 = vmatpush1.msra.mxu0 %v3238_v54  ;;  %686 = vmatprep.mubr.f32.mxu0 %v3948_v0 }
 0x2f3   :  { %648 = vmatprep.subr.mxu0 %v3240_v55  ;;  %726 = vmatprep.subr.mxu1 %v3321_v44 }
 0x2f4   :  { %649 = vmatpush1.msra.mxu0 %v3243_v56  ;;  %727 = vmatpush1.msra.mxu1 %v3325_v45 }
 0x2f5   :  { %650 = vmatprep.subr.mxu0 %v3249_v58  ;;  %760 = vmatprep.mubr.f32.mxu1 %v3948_v0 }
 0x2f6   :  { %651 = vmatpush1.msra.mxu0 %v3253_v59  ;;  %941 = vmatprep.subr.mxu1 %v3236_v53 }
 0x2f7   :  { %652 = vmatprep.subr.mxu0 %v3256_v60 }
 0x2f8   :  { %653 = vmatpush1.msra.mxu0 %v3262_v62 }
 0x2f9   :  { %823 = vmatprep.subr.mxu0 %v3130_v1 }
 0x3a1   :  { %v383_v51 = vpop.f32.mrf.mxu0 }
 0x3a2   :  { %v578_v47 = vpop.f32.mrf.mxu1 }
 0x3a3   :  { %v579_v49 = vadd.f32 %v578_v47, %v505_v46  ;;  %v385_v57 = vpop.f32.mrf.mxu0 }
 0x3a5   :  { %2842 = vtanh.f32 %v579_v49  ;;  %v2761_v17 = vmul.f32 -1.442695, %v579_v49 }
 0x3b1   :  { %v454_v5 = vpop.f32.mrf.mxu0 }
 0x3b2   :  { %v2843_v7 = vpop.eup %2842  ;;  %v455_v8 = vadd.f32 %v454_v5, %v383_v51  ;;  %v580_v5 = vpop.f32.mrf.mxu1 }
 0x3b3   :  { %592 = vrot.lane.b32.xlu1 %v2843_v7, %s3073_s3  ;;  %v506_v7 = vrot.slane %v3226_v39, 2  ;;  %v456_v49 = vpop.f32.mrf.mxu0 }
 0x3b4   :  { %v470_v10 = vadd.f32 %v3357_v63, %v455_v8 }
 0x3b5   :  { %v581_v8 = vadd.f32 %v580_v5, %v506_v7 }
 0x3b6   :  { %2844 = vtanh.f32 %v470_v10  ;;  %v2759_v47 = vmul.f32 -1.442695, %v470_v10 }
 0x3b7   :  { %2846 = vpow2.f32 %v2761_v17  ;;  %v457_v17 = vadd.f32 %v456_v49, %v385_v57 }
 0x3b8   :  { %2848 = vpow2.f32 %v2759_v47 }
 0x3c3   :  { %v2845_v13 = vpop.eup %2844 }
 0x3c4   :  { %481 = vrot.lane.b32.xlu1 %v2845_v13, %s3073_s3  ;;  %v2847_v46 = vpop.eup %2846 }
 0x3c5   :  { %v586_v0 = vadd.f32 1.0, %v2847_v46  ;;  %v2849_v27 = vpop.eup %2848 }
 0x3c6   :  { %v475_v31 = vadd.f32 1.0, %v2849_v27 }
 0x3c7   :  { %2850 = vrcp.f32 %v586_v0  ;;  %v471_v0 = vadd.f32 %v3210_v30, %v457_v17 }
 0x3c8   :  { %2852 = vrcp.f32 %v475_v31 }
 0x3d4   :  { %v2851_v29 = vpop.eup %2850 }
 0x3d5   :  { %v2853_v13 = vpop.eup %2852 }
 0x3d6   :  { %v479_v5 = vmul.f32 0.0, %v2853_v13 }
 0x425   :  { %v593_v50 = vpop.permute.xlu1 %592 }
 0x426   :  { %v595_v51 = vmul.f32 %v2851_v29, %v593_v50  ;;  %v590_v50 = vmul.f32 %v2851_v29, %v3233_v52 }
 0x428   :  { %597 = vrot.lane.b32.xlu0 %v595_v51, %s3073_s3 }
 0x42c   :  { %603 = vrot.lane.b32.xlu0 %v581_v8, %s3073_s3 }
 0x436   :  { %v482_v10 = vpop.permute.xlu1 %481 }
 0x437   :  { %v484_v46 = vmul.f32 %v2853_v13, %v482_v10 }
 0x439   :  { %486 = vrot.lane.b32.xlu1 %v484_v46, %s3073_s3 }
 0x43d   :  { %492 = vrot.lane.b32.xlu1 %v471_v0, %s3073_s3 }
 0x49a   :  { %v598_v47 = vpop.permute.xlu0 %597 }
 0x49b   :  { %v3369_v27 = vadd.f32 %v598_v47, %v590_v50 }
 0x49d   :  { %2854 = vtanh.f32 %v3369_v27 }
 0x49e   :  { %v604_v51 = vpop.permute.xlu0 %603 }
 0x4aa   :  { %v2855_v31 = vpop.eup %2854 }
 0x4ab   :  { %v606_v7 = vadd.f32 %v2855_v31, %v604_v51  ;;  %v487_v8 = vpop.permute.xlu1 %486  ;;  %v3956_v31 = vmov 0.0  }
 0x4ac   :  { %v3372_v57 = vadd.f32 %v487_v8, %v479_v5  ;;  %v800_v8 = vrot.slane %v3221_v35, 4 }
 0x4ad   :  { %608 = vrot.lane.b32.xlu0 %v606_v7, %s3073_s3 }
 0x4ae   :  { %2856 = vtanh.f32 %v3372_v57 }
 0x4af   :  { %v493_v10 = vpop.permute.xlu1 %492 }
 0x4bb   :  { %v2857_v49 = vpop.eup %2856 }
 0x4bc   :  { %v495_v17 = vadd.f32 %v2857_v49, %v493_v10 }
 0x4be   :  { %497 = vrot.lane.b32.xlu1 %v495_v17, %s3073_s3 }
 0x51f   :  { %v609_v52 = vpop.permute.xlu0 %608 }
 0x520   :  { %v611_v46 = vmul.f32 %v2851_v29, %v609_v52 }
 0x522   :  { %618 = vrot.lane.b32.xlu0 %v611_v46, %s3074_s0 }
 0x530   :  { %v498_v0 = vpop.permute.xlu1 %497 }
 0x531   :  { %v500_v50 = vmul.f32 %v2853_v13, %v498_v0 }
 0x533   :  { %613 = vrot.lane.b32.xlu0 %v500_v50, %s3074_s0 }
 0x594   :  { %v619_v47 = vpop.permute.xlu0 %618 }
 0x595   :  { %2762 = vmatmul.mubr.msk.f32.vlgmr.msra.gmra.mxu0 %vm124_vm0, %v619_v47  ;;  %v799_v29 = vsel %vm124_vm0, %v619_v47, %v3369_v27 }
 0x596   :  { %824 = vmatpush1.msra.mxu0 %v3132_v2  ;;  %871 = vmatprep.mubr.f32.mxu0 %v3956_v31 }
 0x597   :  { %825 = vmatprep.subr.mxu0 %v3134_v3 }
 0x598   :  { %826 = vmatpush1.msra.mxu0 %v3137_v4 }
 0x599   :  { %827 = vmatprep.subr.mxu0 %v3140_v6 }
 0x59a   :  { %828 = vmatpush1.msra.mxu0 %v3143_v9 }
 0x59b   :  { %829 = vmatprep.subr.mxu0 %v3146_v11 }
 0x59c   :  { %830 = vmatpush1.msra.mxu0 %v3149_v14 }
 0x59d   :  { %831 = vmatprep.subr.mxu0 %v3152_v16 }
 0x59e   :  { %832 = vmatpush1.msra.mxu0 %v3155_v18 }
 0x59f   :  { %833 = vmatprep.subr.mxu0 %v3161_v20 }
 0x5a0   :  { %834 = vmatpush1.msra.mxu0 %v3164_v21 }
 0x5a1   :  { %835 = vmatprep.subr.mxu0 %v3168_v22 }
 0x5a2   :  { %836 = vmatpush1.msra.mxu0 %v3171_v23 }
 0x5a3   :  { %837 = vmatprep.subr.mxu0 %v3175_v24 }
 0x5a4   :  { %838 = vmatpush1.msra.mxu0 %v3178_v25 }
 0x5a5   :  { %2765 = vmatmul.mubr.msk.f32.vlgmr.msra.gmra.mxu0 %vm208_vm1, %v799_v29  ;;  %v614_v13 = vpop.permute.xlu0 %613  ;;  %1007 = vmatprep.subr.mxu0 %v3259_v61 }
 0x5a6   :  { %v616_v51 = vsel %vm124_vm0, %v614_v13, %v3372_v57  ;;  %1008 = vmatpush1.msra.mxu0 %v3271_v12  ;;  %1055 = vmatprep.mubr.f32.mxu0 %v3956_v31  ;;  %v801_v13 = vrot.slane %v3226_v39, 4 }
 0x5a7   :  { %2763 = vmatmul.mubr.msk.f32.vlgmr.msra.gmra.mxu1 %vm208_vm1, %v616_v51  ;;  %1009 = vmatprep.subr.mxu0 %v3273_v15 }
 0x5a8   :  { %942 = vmatpush1.msra.mxu1 %v3238_v54  ;;  %1010 = vmatpush1.msra.mxu0 %v3278_v19 }
 0x5a9   :  { %943 = vmatprep.subr.mxu1 %v3240_v55  ;;  %1011 = vmatprep.subr.mxu0 %v3282_v26 }
 0x5aa   :  { %944 = vmatpush1.msra.mxu1 %v3243_v56  ;;  %1012 = vmatpush1.msra.mxu0 %v3285_v28 }
 0x5ab   :  { %945 = vmatprep.subr.mxu1 %v3249_v58  ;;  %1013 = vmatprep.subr.mxu0 %v3289_v32 }
 0x5ac   :  { %946 = vmatpush1.msra.mxu1 %v3253_v59  ;;  %1014 = vmatpush1.msra.mxu0 %v3293_v34 }
 0x5ad   :  { %947 = vmatprep.subr.mxu1 %v3256_v60  ;;  %1015 = vmatprep.subr.mxu0 %v3297_v37 }
 0x5ae   :  { %948 = vmatpush1.msra.mxu1 %v3262_v62  ;;  %1016 = vmatpush1.msra.mxu0 %v3301_v38 }
 0x5af   :  { %981 = vmatprep.mubr.f32.mxu1 %v3956_v31  ;;  %1017 = vmatprep.subr.mxu0 %v3305_v40 }
 0x5b0   :  { %1118 = vmatprep.subr.mxu1 %v3130_v1  ;;  %1018 = vmatpush1.msra.mxu0 %v3309_v41 }
 0x5b1   :  { %1019 = vmatprep.subr.mxu0 %v3313_v42 }
 0x5b2   :  { %1020 = vmatpush1.msra.mxu0 %v3317_v43 }
 0x5b3   :  { %1021 = vmatprep.subr.mxu0 %v3321_v44 }
 0x5b4   :  { %1022 = vmatpush1.msra.mxu0 %v3325_v45 }
 0x5b5   :  { %1236 = vmatprep.subr.mxu0 %v3236_v53 }
 0x655   :  { %v688_v5 = vpop.f32.mrf.mxu0 }
 0x657   :  { %v690_v7 = vpop.f32.mrf.mxu0 }
 0x665   :  { %v873_v49 = vpop.f32.mrf.mxu0 }
 0x666   :  { %v874_v10 = vadd.f32 %v873_v49, %v800_v8 }
 0x667   :  { %v762_v17 = vpop.f32.mrf.mxu1  ;;  %v875_v47 = vpop.f32.mrf.mxu0 }
 0x668   :  { %2858 = vtanh.f32 %v874_v10  ;;  %v763_v52 = vadd.f32 %v762_v17, %v688_v5  ;;  %v876_v51 = vadd.f32 %v875_v47, %v801_v13  ;;  %v2766_v5 = vmul.f32 -1.442695, %v874_v10 }
 0x669   :  { %v764_v29 = vpop.f32.mrf.mxu1 }
 0x66a   :  { %v767_v46 = vadd.f32 %v763_v52, %v3357_v63  ;;  %v765_v36 = vadd.f32 %v764_v29, %v690_v7 }
 0x66c   :  { %2860 = vtanh.f32 %v767_v46  ;;  %v768_v8 = vadd.f32 %v765_v36, %v3210_v30  ;;  %v2764_v49 = vmul.f32 -1.442695, %v767_v46 }
 0x66d   :  { %2862 = vpow2.f32 %v2766_v5 }
 0x66e   :  { %2864 = vpow2.f32 %v2764_v49 }
 0x675   :  { %v2859_v0 = vpop.eup %2858 }
 0x676   :  { %887 = vrot.lane.b32.xlu1 %v2859_v0, %s3073_s3 }
 0x679   :  { %v2861_v50 = vpop.eup %2860 }
 0x67a   :  { %778 = vrot.lane.b32.xlu0 %v2861_v50, %s3073_s3  ;;  %v2863_v17 = vpop.eup %2862 }
 0x67b   :  { %v881_v52 = vadd.f32 1.0, %v2863_v17  ;;  %v2865_v0 = vpop.eup %2864 }
 0x67c   :  { %v772_v48 = vadd.f32 1.0, %v2865_v0 }
 0x67d   :  { %2866 = vrcp.f32 %v881_v52 }
 0x67e   :  { %898 = vrot.lane.b32.xlu0 %v876_v51, %s3073_s3  ;;  %2868 = vrcp.f32 %v772_v48 }
 0x682   :  { %789 = vrot.lane.b32.xlu0 %v768_v8, %s3073_s3 }
 0x68a   :  { %v2867_v33 = vpop.eup %2866 }
 0x68b   :  { %v2869_v7 = vpop.eup %2868  ;;  %v885_v10 = vmul.f32 %v2867_v33, %v3369_v27 }
 0x68c   :  { %v776_v51 = vmul.f32 %v2869_v7, %v3372_v57 }
 0x6e8   :  { %v888_v50 = vpop.permute.xlu1 %887 }
 0x6e9   :  { %v890_v47 = vmul.f32 %v2867_v33, %v888_v50 }
 0x6eb   :  { %892 = vrot.lane.b32.xlu1 %v890_v47, %s3073_s3 }
 0x6ec   :  { %v779_v29 = vpop.permute.xlu0 %778 }
 0x6ed   :  { %v781_v36 = vmul.f32 %v2869_v7, %v779_v29 }
 0x6ef   :  { %783 = vrot.lane.b32.xlu1 %v781_v36, %s3073_s3 }
 0x6f0   :  { %v899_v5 = vpop.permute.xlu0 %898 }
 0x6f4   :  { %v790_v0 = vpop.permute.xlu0 %789 }
 0x75d   :  { %v893_v46 = vpop.permute.xlu1 %892 }
 0x75e   :  { %v3440_v13 = vadd.f32 %v893_v46, %v885_v10 }
 0x760   :  { %2870 = vtanh.f32 %v3440_v13 }
 0x761   :  { %v784_v48 = vpop.permute.xlu1 %783 }
 0x762   :  { %v3444_v8 = vadd.f32 %v784_v48, %v776_v51 }
 0x764   :  { %2872 = vtanh.f32 %v3444_v8 }
 0x76d   :  { %v2871_v49 = vpop.eup %2870 }
 0x76e   :  { %v901_v17 = vadd.f32 %v2871_v49, %v899_v5  ;;  %v1095_v49 = vrot.slane %v3221_v35, 6 }
 0x770   :  { %903 = vrot.lane.b32.xlu1 %v901_v17, %s3073_s3 }
 0x771   :  { %v2873_v52 = vpop.eup %2872 }
 0x772   :  { %v792_v27 = vadd.f32 %v2873_v52, %v790_v0 }
 0x774   :  { %794 = vrot.lane.b32.xlu0 %v792_v27, %s3073_s3 }
 0x7e2   :  { %v904_v50 = vpop.permute.xlu1 %903 }
 0x7e3   :  { %v906_v47 = vmul.f32 %v2867_v33, %v904_v50 }
 0x7e5   :  { %913 = vrot.lane.b32.xlu1 %v906_v47, %s3074_s0  ;;  %v1096_v47 = vrot.slane %v3226_v39, 6 }
 0x7e6   :  { %v795_v57 = vpop.permute.xlu0 %794 }
 0x7e7   :  { %v797_v29 = vmul.f32 %v2869_v7, %v795_v57 }
 0x7e9   :  { %908 = vrot.lane.b32.xlu0 %v797_v29, %s3074_s0 }
 0x857   :  { %v914_v36 = vpop.permute.xlu1 %913 }
 0x858   :  { %2767 = vmatmul.mubr.msk.f32.vlgmr.msra.gmra.mxu1 %vm124_vm0, %v914_v36  ;;  %v1094_v7 = vsel %vm124_vm0, %v914_v36, %v3440_v13 }
 0x859   :  { %1119 = vmatpush1.msra.mxu1 %v3132_v2  ;;  %1166 = vmatprep.mubr.f32.mxu1 %v3956_v31 }
 0x85a   :  { %1120 = vmatprep.subr.mxu1 %v3134_v3 }
 0x85b   :  { %1121 = vmatpush1.msra.mxu1 %v3137_v4  ;;  %v909_v10 = vpop.permute.xlu0 %908 }
 0x85c   :  { %1122 = vmatprep.subr.mxu1 %v3140_v6  ;;  %v911_v33 = vsel %vm124_vm0, %v909_v10, %v3444_v8 }
 0x85d   :  { %1123 = vmatpush1.msra.mxu1 %v3143_v9  ;;  %2768 = vmatmul.mubr.msk.f32.vlgmr.msra.gmra.mxu0 %vm208_vm1, %v911_v33 }
 0x85e   :  { %1124 = vmatprep.subr.mxu1 %v3146_v11  ;;  %1237 = vmatpush1.msra.mxu0 %v3238_v54 }
 0x85f   :  { %1125 = vmatpush1.msra.mxu1 %v3149_v14  ;;  %1238 = vmatprep.subr.mxu0 %v3240_v55 }
 0x860   :  { %1126 = vmatprep.subr.mxu1 %v3152_v16  ;;  %1239 = vmatpush1.msra.mxu0 %v3243_v56 }
 0x861   :  { %1127 = vmatpush1.msra.mxu1 %v3155_v18  ;;  %1240 = vmatprep.subr.mxu0 %v3249_v58 }
 0x862   :  { %1128 = vmatprep.subr.mxu1 %v3161_v20  ;;  %1241 = vmatpush1.msra.mxu0 %v3253_v59 }
 0x863   :  { %1129 = vmatpush1.msra.mxu1 %v3164_v21  ;;  %1242 = vmatprep.subr.mxu0 %v3256_v60 }
 0x864   :  { %1130 = vmatprep.subr.mxu1 %v3168_v22  ;;  %1243 = vmatpush1.msra.mxu0 %v3262_v62 }
 0x865   :  { %1131 = vmatpush1.msra.mxu1 %v3171_v23  ;;  %1276 = vmatprep.mubr.f32.mxu0 %v3956_v31 }
 0x866   :  { %1132 = vmatprep.subr.mxu1 %v3175_v24  ;;  %1409 = vmatprep.subr.mxu0 %v3130_v1 }
 0x867   :  { %1133 = vmatpush1.msra.mxu1 %v3178_v25 }
 0x868   :  { %2770 = vmatmul.mubr.msk.f32.vlgmr.msra.gmra.mxu1 %vm208_vm1, %v1094_v7  ;;  %1302 = vmatprep.subr.mxu1 %v3259_v61 }
 0x869   :  { %1303 = vmatpush1.msra.mxu1 %v3271_v12  ;;  %1350 = vmatprep.mubr.f32.mxu1 %v3956_v31 }
 0x86a   :  { %1304 = vmatprep.subr.mxu1 %v3273_v15 }
 0x86b   :  { %1305 = vmatpush1.msra.mxu1 %v3278_v19 }
 0x86c   :  { %1306 = vmatprep.subr.mxu1 %v3282_v26 }
 0x86d   :  { %1307 = vmatpush1.msra.mxu1 %v3285_v28 }
 0x86e   :  { %1308 = vmatprep.subr.mxu1 %v3289_v32 }
 0x86f   :  { %1309 = vmatpush1.msra.mxu1 %v3293_v34 }
 0x870   :  { %1310 = vmatprep.subr.mxu1 %v3297_v37 }
 0x871   :  { %1311 = vmatpush1.msra.mxu1 %v3301_v38 }
 0x872   :  { %1312 = vmatprep.subr.mxu1 %v3305_v40 }
 0x873   :  { %1313 = vmatpush1.msra.mxu1 %v3309_v41 }
 0x874   :  { %1314 = vmatprep.subr.mxu1 %v3313_v42 }
 0x875   :  { %1315 = vmatpush1.msra.mxu1 %v3317_v43 }
 0x876   :  { %1316 = vmatprep.subr.mxu1 %v3321_v44 }
 0x877   :  { %1317 = vmatpush1.msra.mxu1 %v3325_v45 }
 0x878   :  { %1527 = vmatprep.subr.mxu1 %v3236_v53 }
 0x918   :  { %v983_v1 = vpop.f32.mrf.mxu1 }
 0x91a   :  { %v985_v5 = vpop.f32.mrf.mxu1 }
 0x91d   :  { %v1057_v46 = vpop.f32.mrf.mxu0 }
 0x91e   :  { %v1058_v51 = vadd.f32 %v1057_v46, %v983_v1 }
 0x91f   :  { %v1059_v27 = vpop.f32.mrf.mxu0 }
 0x920   :  { %v1062_v48 = vadd.f32 %v1058_v51, %v3357_v63  ;;  %v1060_v57 = vadd.f32 %v1059_v27, %v985_v5 }
 0x922   :  { %2874 = vtanh.f32 %v1062_v48  ;;  %v1063_v36 = vadd.f32 %v1060_v57, %v3210_v30  ;;  %v2769_v33 = vmul.f32 -1.442695, %v1062_v48 }
 0x928   :  { %v1168_v17 = vpop.f32.mrf.mxu1 }
 0x929   :  { %v1169_v52 = vadd.f32 %v1168_v17, %v1095_v49 }
 0x92a   :  { %v1170_v50 = vpop.f32.mrf.mxu1 }
 0x92b   :  { %2876 = vtanh.f32 %v1169_v52  ;;  %v1171_v29 = vadd.f32 %v1170_v50, %v1096_v47  ;;  %v2771_v35 = vmul.f32 -1.442695, %v1169_v52 }
 0x92d   :  { %2878 = vpow2.f32 %v2771_v35 }
 0x92e   :  { %2880 = vpow2.f32 %v2769_v33 }
 0x92f   :  { %v2875_v0 = vpop.eup %2874 }
 0x930   :  { %1073 = vrot.lane.b32.xlu0 %v2875_v0, %s3073_s3 }
 0x934   :  { %1193 = vrot.lane.b32.xlu0 %v1171_v29, %s3073_s3 }
 0x938   :  { %v2877_v10 = vpop.eup %2876  ;;  %1084 = vrot.lane.b32.xlu0 %v1063_v36, %s3073_s3 }
 0x939   :  { %1182 = vrot.lane.b32.xlu1 %v2877_v10, %s3073_s3 }
 0x93a   :  { %v2879_v7 = vpop.eup %2878 }
 0x93b   :  { %v1176_v1 = vadd.f32 1.0, %v2879_v7  ;;  %v2881_v39 = vpop.eup %2880 }
 0x93c   :  { %v1067_v46 = vadd.f32 1.0, %v2881_v39 }
 0x93d   :  { %2882 = vrcp.f32 %v1176_v1 }
 0x93e   :  { %2884 = vrcp.f32 %v1067_v46 }
 0x94a   :  { %v2883_v51 = vpop.eup %2882 }
 0x94b   :  { %v2885_v0 = vpop.eup %2884  ;;  %v1180_v48 = vmul.f32 %v2883_v51, %v3440_v13 }
 0x94c   :  { %v1071_v47 = vmul.f32 %v2885_v0, %v3444_v8 }
 0x9a2   :  { %v1074_v17 = vpop.permute.xlu0 %1073 }
 0x9a3   :  { %v1076_v27 = vmul.f32 %v2885_v0, %v1074_v17 }
 0x9a6   :  { %v1194_v36 = vpop.permute.xlu0 %1193 }
 0x9aa   :  { %v1085_v7 = vpop.permute.xlu0 %1084 }
 0x9ab   :  { %v1183_v5 = vpop.permute.xlu1 %1182 }
 0x9ac   :  { %v1185_v49 = vmul.f32 %v2883_v51, %v1183_v5 }
 0x9ae   :  { %1187 = vrot.lane.b32.xlu1 %v1185_v49, %s3073_s3 }
 0x9b2   :  { %1078 = vrot.lane.b32.xlu1 %v1076_v27, %s3073_s3 }
 0xa20   :  { %v1188_v52 = vpop.permute.xlu1 %1187 }
 0xa21   :  { %v3512_v50 = vadd.f32 %v1188_v52, %v1180_v48 }
 0xa23   :  { %2886 = vtanh.f32 %v3512_v50 }
 0xa24   :  { %v1079_v57 = vpop.permute.xlu1 %1078 }
 0xa25   :  { %v3516_v29 = vadd.f32 %v1079_v57, %v1071_v47 }
 0xa27   :  { %2888 = vtanh.f32 %v3516_v29 }
 0xa30   :  { %v2887_v10 = vpop.eup %2886 }
 0xa31   :  { %v1196_v35 = vadd.f32 %v2887_v10, %v1194_v36 }
 0xa33   :  { %1198 = vrot.lane.b32.xlu1 %v1196_v35, %s3073_s3 }
 0xa34   :  { %v2889_v33 = vpop.eup %2888 }
 0xa35   :  { %v1087_v13 = vadd.f32 %v2889_v33, %v1085_v7 }
 0xa37   :  { %1089 = vrot.lane.b32.xlu0 %v1087_v13, %s3073_s3 }
 0xaa5   :  { %v1199_v1 = vpop.permute.xlu1 %1198 }
 0xaa6   :  { %v1201_v39 = vmul.f32 %v2883_v51, %v1199_v1 }
 0xaa8   :  { %1208 = vrot.lane.b32.xlu1 %v1201_v39, %s3074_s0 }
 0xaa9   :  { %v1090_v8 = vpop.permute.xlu0 %1089 }
 0xaaa   :  { %v1092_v46 = vmul.f32 %v2885_v0, %v1090_v8 }
 0xaac   :  { %1203 = vrot.lane.b32.xlu0 %v1092_v46, %s3074_s0 }
 0xb1a   :  { %v1209_v5 = vpop.permute.xlu1 %1208 }
 0xb1b   :  { %2772 = vmatmul.mubr.msk.f32.vlgmr.msra.gmra.mxu0 %vm124_vm0, %v1209_v5 }
 0xb1c   :  { %1410 = vmatpush1.msra.mxu0 %v3132_v2  ;;  %1457 = vmatprep.mubr.f32.mxu0 %v3956_v31  ;;  %v3550_v2 = vld [vmem:[#allocation5 + $0x78] sm:$0xff] }
 0xb1d   :  { %1411 = vmatprep.subr.mxu0 %v3134_v3  ;;  %v1389_v3 = vsel %vm124_vm0, %v1209_v5, %v3512_v50 }
 0xb1e   :  { %1412 = vmatpush1.msra.mxu0 %v3137_v4  ;;  %v1204_v49 = vpop.permute.xlu0 %1203 }
 0xb1f   :  { %1413 = vmatprep.subr.mxu0 %v3140_v6  ;;  %v1206_v51 = vsel %vm124_vm0, %v1204_v49, %v3516_v29 }
 0xb20   :  { %1414 = vmatpush1.msra.mxu0 %v3143_v9  ;;  %2773 = vmatmul.mubr.msk.f32.vlgmr.msra.gmra.mxu1 %vm208_vm1, %v1206_v51 }
 0xb21   :  { %1415 = vmatprep.subr.mxu0 %v3146_v11  ;;  %1528 = vmatpush1.msra.mxu1 %v3238_v54 }
 0xb22   :  { %1416 = vmatpush1.msra.mxu0 %v3149_v14  ;;  %1529 = vmatprep.subr.mxu1 %v3240_v55 }
 0xb23   :  { %1417 = vmatprep.subr.mxu0 %v3152_v16  ;;  %1530 = vmatpush1.msra.mxu1 %v3243_v56  ;;  %v3957_v16 = vld [vmem:[#allocation11_spill] sm:$0xff] }
 0xb24   :  { %1418 = vmatpush1.msra.mxu0 %v3155_v18  ;;  %1531 = vmatprep.subr.mxu1 %v3249_v58  ;;  %v3958_v18 = vld [vmem:[#allocation13_spill] sm:$0xff] }
 0xb25   :  { %1419 = vmatprep.subr.mxu0 %v3161_v20  ;;  %1532 = vmatpush1.msra.mxu1 %v3253_v59  ;;  %v3578_v20 = vadd.f32 %v3958_v18, %v3957_v16 }
 0xb26   :  { %1420 = vmatpush1.msra.mxu0 %v3164_v21  ;;  %1533 = vmatprep.subr.mxu1 %v3256_v60 }
 0xb27   :  { %1421 = vmatprep.subr.mxu0 %v3168_v22  ;;  %1534 = vmatpush1.msra.mxu1 %v3262_v62 }
 0xb28   :  { %1422 = vmatpush1.msra.mxu0 %v3171_v23  ;;  %1567 = vmatprep.mubr.f32.mxu1 %v3956_v31 }
 0xb29   :  { %1423 = vmatprep.subr.mxu0 %v3175_v24  ;;  %1706 = vmatprep.subr.mxu1 %v3550_v2 }
 0xb2a   :  { %1424 = vmatpush1.msra.mxu0 %v3178_v25 }
 0xb2b   :  { %2775 = vmatmul.mubr.msk.f32.vlgmr.msra.gmra.mxu0 %vm208_vm1, %v1389_v3  ;;  %1593 = vmatprep.subr.mxu0 %v3259_v61  ;;  %v3959_v61 = vld [vmem:[#allocation12_spill] sm:$0xff] }
 0xb2c   :  { %1594 = vmatpush1.msra.mxu0 %v3271_v12  ;;  %1641 = vmatprep.mubr.f32.mxu0 %v3956_v31 }
 0xb2d   :  { %1595 = vmatprep.subr.mxu0 %v3273_v15 }
 0xb2e   :  { %1596 = vmatpush1.msra.mxu0 %v3278_v19 }
 0xb2f   :  { %1597 = vmatprep.subr.mxu0 %v3282_v26 }
 0xb30   :  { %1598 = vmatpush1.msra.mxu0 %v3285_v28 }
 0xb31   :  { %1599 = vmatprep.subr.mxu0 %v3289_v32 }
 0xb32   :  { %1600 = vmatpush1.msra.mxu0 %v3293_v34 }
 0xb33   :  { %1601 = vmatprep.subr.mxu0 %v3297_v37 }
 0xb34   :  { %1602 = vmatpush1.msra.mxu0 %v3301_v38 }
 0xb35   :  { %1603 = vmatprep.subr.mxu0 %v3305_v40 }
 0xb36   :  { %1604 = vmatpush1.msra.mxu0 %v3309_v41 }
 0xb37   :  { %1605 = vmatprep.subr.mxu0 %v3313_v42 }
 0xb38   :  { %1606 = vmatpush1.msra.mxu0 %v3317_v43 }
 0xb39   :  { %1607 = vmatprep.subr.mxu0 %v3321_v44 }
 0xb3a   :  { %1608 = vmatpush1.msra.mxu0 %v3325_v45 }
 0xb3b   :  { %1824 = vmatprep.subr.mxu0 %v3236_v53  ;;  %v3960_v53 = vld [vmem:[#allocation14_spill] sm:$0xff] }
 0xb3c   :  { %v3583_v17 = vadd.f32 %v3960_v53, %v3959_v61  ;;  %v3610_v61 = vld [vmem:[#allocation5 + $0x68] sm:$0xff]  ;;  %v3613_v53 = vld [vmem:[#allocation5 + $0x60] sm:$0xff] }
 0xbdb   :  { %v1278_v4 = vpop.f32.mrf.mxu0 }
 0xbdd   :  { %v1280_v14 = vpop.f32.mrf.mxu0 }
 0xbe0   :  { %v1352_v6 = vpop.f32.mrf.mxu1 }
 0xbe1   :  { %v1353_v9 = vadd.f32 %v1352_v6, %v1278_v4 }
 0xbe2   :  { %v1354_v24 = vpop.f32.mrf.mxu1 }
 0xbe3   :  { %v1357_v11 = vadd.f32 %v1353_v9, %v3357_v63  ;;  %v1355_v0 = vadd.f32 %v1354_v24, %v1280_v14 }
 0xbe5   :  { %2890 = vtanh.f32 %v1357_v11  ;;  %v1358_v48 = vadd.f32 %v1355_v0, %v3210_v30  ;;  %v2774_v57 = vmul.f32 -1.442695, %v1357_v11 }
 0xbeb   :  { %v1459_v21 = vpop.f32.mrf.mxu0 }
 0xbec   :  { %v1460_v22 = vadd.f32 %v1459_v21, %v3578_v20 }
 0xbed   :  { %v1461_v25 = vpop.f32.mrf.mxu0 }
 0xbee   :  { %2892 = vtanh.f32 %v1460_v22  ;;  %v1462_v27 = vadd.f32 %v1461_v25, %v3583_v17  ;;  %v2776_v47 = vmul.f32 -1.442695, %v1460_v22  ;;  %v3606_v25 = vld [vmem:[#allocation5 + $0x70] sm:$0xff] }
 0xbf0   :  { %2894 = vpow2.f32 %v2776_v47  ;;  %v3625_v47 = vld [vmem:[#allocation5 + $0x48] sm:$0xff] }
 0xbf1   :  { %2896 = vpow2.f32 %v2774_v57  ;;  %v3629_v57 = vld [vmem:[#allocation5 + $0x40] sm:$0xff] }
 0xbf2   :  { %v2891_v23 = vpop.eup %2890 }
 0xbf3   :  { %1368 = vrot.lane.b32.xlu0 %v2891_v23, %s3073_s3 }
 0xbf7   :  { %1484 = vrot.lane.b32.xlu0 %v1462_v27, %s3073_s3  ;;  %v3616_v27 = vld [vmem:[#allocation5 + $0x58] sm:$0xff] }
 0xbfb   :  { %v2893_v52 = vpop.eup %2892  ;;  %1379 = vrot.lane.b32.xlu0 %v1358_v48, %s3073_s3 }
 0xbfc   :  { %1473 = vrot.lane.b32.xlu1 %v2893_v52, %s3073_s3  ;;  %v3621_v52 = vld [vmem:[#allocation5 + $0x50] sm:$0xff] }
 0xbfd   :  { %v2895_v36 = vpop.eup %2894 }
 0xbfe   :  { %v1467_v10 = vadd.f32 1.0, %v2895_v36  ;;  %v2897_v35 = vpop.eup %2896  ;;  %v3633_v36 = vld [vmem:[#allocation5 + $0x38] sm:$0xff] }
 0xbff   :  { %v1362_v33 = vadd.f32 1.0, %v2897_v35  ;;  %v3641_v35 = vld [vmem:[#allocation5 + $0x28] sm:$0xff] }
 0xc00   :  { %2898 = vrcp.f32 %v1467_v10  ;;  %v3637_v10 = vld [vmem:[#allocation5 + $0x30] sm:$0xff] }
 0xc01   :  { %2900 = vrcp.f32 %v1362_v33 }
 0xc0d   :  { %v2899_v7 = vpop.eup %2898 }
 0xc0e   :  { %v2901_v8 = vpop.eup %2900  ;;  %v1471_v5 = vmul.f32 %v2899_v7, %v3512_v50 }
 0xc0f   :  { %v1366_v3 = vmul.f32 %v2901_v8, %v3516_v29 }
 0xc65   :  { %v1369_v39 = vpop.permute.xlu0 %1368 }
 0xc66   :  { %v1371_v46 = vmul.f32 %v2901_v8, %v1369_v39 }
 0xc69   :  { %v1485_v9 = vpop.permute.xlu0 %1484 }
 0xc6d   :  { %v1380_v18 = vpop.permute.xlu0 %1379 }
 0xc6e   :  { %v1474_v13 = vpop.permute.xlu1 %1473 }
 0xc6f   :  { %v1476_v1 = vmul.f32 %v2899_v7, %v1474_v13 }
 0xc71   :  { %1478 = vrot.lane.b32.xlu1 %v1476_v1, %s3073_s3 }
 0xc75   :  { %1373 = vrot.lane.b32.xlu1 %v1371_v46, %s3073_s3 }
 0xce3   :  { %v1479_v49 = vpop.permute.xlu1 %1478 }
 0xce4   :  { %v3594_v51 = vadd.f32 %v1479_v49, %v1471_v5 }
 0xce6   :  { %2902 = vtanh.f32 %v3594_v51 }
 0xce7   :  { %v1374_v4 = vpop.permute.xlu1 %1373 }
 0xce8   :  { %v3598_v6 = vadd.f32 %v1374_v4, %v1366_v3 }
 0xcea   :  { %2904 = vtanh.f32 %v3598_v6 }
 0xcf3   :  { %v2903_v11 = vpop.eup %2902 }
 0xcf4   :  { %v1487_v14 = vadd.f32 %v2903_v11, %v1485_v9 }
 0xcf6   :  { %1489 = vrot.lane.b32.xlu1 %v1487_v14, %s3073_s3 }
 0xcf7   :  { %v2905_v16 = vpop.eup %2904 }
 0xcf8   :  { %v1382_v50 = vadd.f32 %v2905_v16, %v1380_v18 }
 0xcfa   :  { %1384 = vrot.lane.b32.xlu0 %v1382_v50, %s3073_s3 }
 0xd68   :  { %v1490_v21 = vpop.permute.xlu1 %1489 }
 0xd69   :  { %v1492_v22 = vmul.f32 %v2899_v7, %v1490_v21 }
 0xd6b   :  { %1499 = vrot.lane.b32.xlu1 %v1492_v22, %s3074_s0 }
 0xd6c   :  { %v1385_v29 = vpop.permute.xlu0 %1384 }
 0xd6d   :  { %v1387_v23 = vmul.f32 %v2901_v8, %v1385_v29 }
 0xd6f   :  { %1494 = vrot.lane.b32.xlu0 %v1387_v23, %s3074_s0 }
 0xddd   :  { %v1500_v24 = vpop.permute.xlu1 %1499 }
 0xdde   :  { %2777 = vmatmul.mubr.msk.f32.vlgmr.msra.gmra.mxu1 %vm124_vm0, %v1500_v24 }
 0xddf   :  { %1707 = vmatpush1.msra.mxu1 %v3606_v25  ;;  %1754 = vmatprep.mubr.f32.mxu1 %v3956_v31 }
 0xde0   :  { %1708 = vmatprep.subr.mxu1 %v3610_v61 }
 0xde1   :  { %1709 = vmatpush1.msra.mxu1 %v3613_v53  ;;  %v1495_v0 = vpop.permute.xlu0 %1494 }
 0xde2   :  { %1710 = vmatprep.subr.mxu1 %v3616_v27  ;;  %v1497_v48 = vsel %vm124_vm0, %v1495_v0, %v3598_v6 }
 0xde3   :  { %1711 = vmatpush1.msra.mxu1 %v3621_v52  ;;  %2778 = vmatmul.mubr.msk.f32.vlgmr.msra.gmra.mxu0 %vm208_vm1, %v1497_v48 }
 0xde4   :  { %1712 = vmatprep.subr.mxu1 %v3625_v47  ;;  %1825 = vmatpush1.msra.mxu0 %v3238_v54  ;;  %v3645_v54 = vld [vmem:[#allocation5 + $0x20] sm:$0xff] }
 0xde5   :  { %1713 = vmatpush1.msra.mxu1 %v3629_v57  ;;  %1826 = vmatprep.subr.mxu0 %v3240_v55  ;;  %v3649_v55 = vld [vmem:[#allocation5 + $0x18] sm:$0xff] }
 0xde6   :  { %1714 = vmatprep.subr.mxu1 %v3633_v36  ;;  %1827 = vmatpush1.msra.mxu0 %v3243_v56  ;;  %v3653_v56 = vld [vmem:[#allocation5 + $0x10] sm:$0xff] }
 0xde7   :  { %1715 = vmatpush1.msra.mxu1 %v3637_v10  ;;  %1828 = vmatprep.subr.mxu0 %v3249_v58  ;;  %v3657_v58 = vld [vmem:[#allocation5 + $0x8] sm:$0xff] }
 0xde8   :  { %1716 = vmatprep.subr.mxu1 %v3641_v35  ;;  %1829 = vmatpush1.msra.mxu0 %v3253_v59  ;;  %v1680_v59 = vsel %vm124_vm0, %v1500_v24, %v3594_v51 }
 0xde9   :  { %1717 = vmatpush1.msra.mxu1 %v3645_v54  ;;  %1830 = vmatprep.subr.mxu0 %v3256_v60  ;;  %v3663_v60 = vld [vmem:[#allocation5] sm:$0xff] }
 0xdea   :  { %1718 = vmatprep.subr.mxu1 %v3649_v55  ;;  %1831 = vmatpush1.msra.mxu0 %v3262_v62  ;;  %v3667_v62 = vld [vmem:[#allocation5 + $0xf8] sm:$0xff] }
 0xdeb   :  { %1719 = vmatpush1.msra.mxu1 %v3653_v56  ;;  %1864 = vmatprep.mubr.f32.mxu0 %v3956_v31 }
 0xdec   :  { %1720 = vmatprep.subr.mxu1 %v3657_v58  ;;  %2001 = vmatprep.subr.mxu0 %v3550_v2 }
 0xded   :  { %1721 = vmatpush1.msra.mxu1 %v3663_v60 }
 0xdee   :  { %2780 = vmatmul.mubr.msk.f32.vlgmr.msra.gmra.mxu1 %vm208_vm1, %v1680_v59  ;;  %1890 = vmatprep.subr.mxu1 %v3667_v62 }
 0xdef   :  { %1891 = vmatpush1.msra.mxu1 %v3271_v12  ;;  %1938 = vmatprep.mubr.f32.mxu1 %v3956_v31  ;;  %v3686_v12 = vld [vmem:[#allocation2 + $0x78] sm:$0xff] }
 0xdf0   :  { %1892 = vmatprep.subr.mxu1 %v3273_v15 }
 0xdf1   :  { %1893 = vmatpush1.msra.mxu1 %v3278_v19 }
 0xdf2   :  { %1894 = vmatprep.subr.mxu1 %v3282_v26 }
 0xdf3   :  { %1895 = vmatpush1.msra.mxu1 %v3285_v28 }
 0xdf4   :  { %1896 = vmatprep.subr.mxu1 %v3289_v32 }
 0xdf5   :  { %1897 = vmatpush1.msra.mxu1 %v3293_v34  ;;  %v1683_v34 = vrot.slane %v3578_v20, 2 }
 0xdf6   :  { %1898 = vmatprep.subr.mxu1 %v3297_v37 }
 0xdf7   :  { %1899 = vmatpush1.msra.mxu1 %v3301_v38 }
 0xdf8   :  { %1900 = vmatprep.subr.mxu1 %v3305_v40 }
 0xdf9   :  { %1901 = vmatpush1.msra.mxu1 %v3309_v41 }
 0xdfa   :  { %1902 = vmatprep.subr.mxu1 %v3313_v42 }
 0xdfb   :  { %1903 = vmatpush1.msra.mxu1 %v3317_v43  ;;  %v1684_v43 = vrot.slane %v3583_v17, 2 }
 0xdfc   :  { %1904 = vmatprep.subr.mxu1 %v3321_v44 }
 0xdfd   :  { %1905 = vmatpush1.msra.mxu1 %v3325_v45 }
 0xdfe   :  { %2119 = vmatprep.subr.mxu1 %v3686_v12 }
 0xe9e   :  { %v1569_v15 = vpop.f32.mrf.mxu1 }
 0xea0   :  { %v1571_v32 = vpop.f32.mrf.mxu1 }
 0xea3   :  { %v1643_v19 = vpop.f32.mrf.mxu0 }
 0xea4   :  { %v1644_v26 = vadd.f32 %v1643_v19, %v1569_v15 }
 0xea5   :  { %v1645_v41 = vpop.f32.mrf.mxu0 }
 0xea6   :  { %v1648_v28 = vadd.f32 %v1644_v26, %v3357_v63  ;;  %v1646_v44 = vadd.f32 %v1645_v41, %v1571_v32  ;;  %v3734_v41 = vld [vmem:[#allocation2 + $0x58] sm:$0xff] }
 0xea8   :  { %2906 = vtanh.f32 %v1648_v28  ;;  %v1649_v33 = vadd.f32 %v1646_v44, %v3210_v30  ;;  %v2779_v1 = vmul.f32 -1.442695, %v1648_v28  ;;  %v3746_v44 = vld [vmem:[#allocation2 + $0x40] sm:$0xff] }
 0xeae   :  { %v1756_v37 = vpop.f32.mrf.mxu1 }
 0xeaf   :  { %v1757_v38 = vadd.f32 %v1756_v37, %v1683_v34  ;;  %v3722_v37 = vld [vmem:[#allocation2 + $0x70] sm:$0xff] }
 0xeb0   :  { %v1758_v42 = vpop.f32.mrf.mxu1 }
 0xeb1   :  { %2908 = vtanh.f32 %v1757_v38  ;;  %v1759_v45 = vadd.f32 %v1758_v42, %v1684_v43  ;;  %v2781_v13 = vmul.f32 -1.442695, %v1757_v38  ;;  %v3726_v38 = vld [vmem:[#allocation2 + $0x68] sm:$0xff]  ;;  %v3738_v42 = vld [vmem:[#allocation2 + $0x50] sm:$0xff] }
 0xeb2   :  { %v3742_v43 = vld [vmem:[#allocation2 + $0x48] sm:$0xff] }
 0xeb3   :  { %2910 = vpow2.f32 %v2781_v13  ;;  %v3768_v13 = vld [vmem:[#allocation5 + $0xd8] sm:$0xff] }
 0xeb4   :  { %2912 = vpow2.f32 %v2779_v1  ;;  %v3771_v1 = vld [vmem:[#allocation5 + $0xd0] sm:$0xff] }
 0xeb5   :  { %v2907_v40 = vpop.eup %2906 }
 0xeb6   :  { %1659 = vrot.lane.b32.xlu0 %v2907_v40, %s3073_s3  ;;  %v3730_v40 = vld [vmem:[#allocation2 + $0x60] sm:$0xff] }
 0xeba   :  { %1781 = vrot.lane.b32.xlu0 %v1759_v45, %s3073_s3 }
 0xebe   :  { %v2909_v7 = vpop.eup %2908  ;;  %1670 = vrot.lane.b32.xlu0 %v1649_v33, %s3073_s3  ;;  %v3758_v33 = vld [vmem:[#allocation5 + $0xf0] sm:$0xff] }
 0xebf   :  { %1770 = vrot.lane.b32.xlu1 %v2909_v7, %s3073_s3  ;;  %v3762_v7 = vld [vmem:[#allocation5 + $0xe8] sm:$0xff] }
 0xec0   :  { %v2911_v39 = vpop.eup %2910 }
 0xec1   :  { %v1764_v8 = vadd.f32 1.0, %v2911_v39  ;;  %v2913_v46 = vpop.eup %2912  ;;  %v3774_v39 = vld [vmem:[#allocation5 + $0xc8] sm:$0xff] }
 0xec2   :  { %v1653_v5 = vadd.f32 1.0, %v2913_v46  ;;  %v3780_v46 = vld [vmem:[#allocation5 + $0xb8] sm:$0xff] }
 0xec3   :  { %2914 = vrcp.f32 %v1764_v8  ;;  %v3777_v8 = vld [vmem:[#allocation5 + $0xc0] sm:$0xff] }
 0xec4   :  { %2916 = vrcp.f32 %v1653_v5  ;;  %v3783_v5 = vld [vmem:[#allocation5 + $0xb0] sm:$0xff] }
 0xed0   :  { %v2915_v49 = vpop.eup %2914 }
 0xed1   :  { %v2917_v11 = vpop.eup %2916  ;;  %v1768_v16 = vmul.f32 %v2915_v49, %v3594_v51 }
 0xed2   :  { %v1657_v21 = vmul.f32 %v2917_v11, %v3598_v6 }
 0xf28   :  { %v1660_v9 = vpop.permute.xlu0 %1659 }
 0xf29   :  { %v1662_v14 = vmul.f32 %v2917_v11, %v1660_v9  ;;  %v3795_v9 = vld [vmem:[#allocation5 + $0x90] sm:$0xff] }
 0xf2c   :  { %v1782_v23 = vpop.permute.xlu0 %1781 }
 0xf30   :  { %v1671_v59 = vpop.permute.xlu0 %1670 }
 0xf31   :  { %v1771_v3 = vpop.permute.xlu1 %1770 }
 0xf32   :  { %v1773_v4 = vmul.f32 %v2915_v49, %v1771_v3  ;;  %v3789_v3 = vld [vmem:[#allocation5 + $0xa0] sm:$0xff] }
 0xf34   :  { %1775 = vrot.lane.b32.xlu1 %v1773_v4, %s3073_s3  ;;  %v3792_v4 = vld [vmem:[#allocation5 + $0x98] sm:$0xff] }
 0xf38   :  { %1664 = vrot.lane.b32.xlu1 %v1662_v14, %s3073_s3  ;;  %v3801_v14 = vld [vmem:[#allocation5 + $0x80] sm:$0xff] }
 0xfa6   :  { %v1776_v18 = vpop.permute.xlu1 %1775 }
 0xfa7   :  { %v3700_v50 = vadd.f32 %v1776_v18, %v1768_v16 }
 0xfa9   :  { %2918 = vtanh.f32 %v3700_v50 }
 0xfaa   :  { %v1665_v22 = vpop.permute.xlu1 %1664 }
 0xfab   :  { %v3704_v29 = vadd.f32 %v1665_v22, %v1657_v21 }
 0xfad   :  { %2920 = vtanh.f32 %v3704_v29 }
 0xfb6   :  { %v2919_v24 = vpop.eup %2918 }
 0xfb7   :  { %v1784_v0 = vadd.f32 %v2919_v24, %v1782_v23  ;;  %v1978_v24 = vrot.slane %v3578_v20, 4 }
 0xfb9   :  { %1786 = vrot.lane.b32.xlu1 %v1784_v0, %s3073_s3 }
 0xfba   :  { %v2921_v48 = vpop.eup %2920 }
 0xfbb   :  { %v1673_v51 = vadd.f32 %v2921_v48, %v1671_v59 }
 0xfbd   :  { %1675 = vrot.lane.b32.xlu0 %v1673_v51, %s3073_s3 }
0x102b   :  { %v1787_v15 = vpop.permute.xlu1 %1786 }
0x102c   :  { %v1789_v19 = vmul.f32 %v2915_v49, %v1787_v15  ;;  %v3786_v49 = vld [vmem:[#allocation5 + $0xa8] sm:$0xff] }
0x102e   :  { %1796 = vrot.lane.b32.xlu1 %v1789_v19, %s3074_s0 }
0x102f   :  { %v1676_v6 = vpop.permute.xlu0 %1675 }
0x1030   :  { %v1678_v26 = vmul.f32 %v2917_v11, %v1676_v6  ;;  %v3798_v11 = vld [vmem:[#allocation5 + $0x88] sm:$0xff] }
0x1032   :  { %1791 = vrot.lane.b32.xlu0 %v1678_v26, %s3074_s0 }
0x10a0   :  { %v1797_v28 = vpop.permute.xlu1 %1796 }
0x10a1   :  { %2782 = vmatmul.mubr.msk.f32.vlgmr.msra.gmra.mxu0 %vm124_vm0, %v1797_v28  ;;  %v1977_v45 = vsel %vm124_vm0, %v1797_v28, %v3700_v50 }
0x10a2   :  { %2002 = vmatpush1.msra.mxu0 %v3606_v25  ;;  %2049 = vmatprep.mubr.f32.mxu0 %v3956_v31 }
0x10a3   :  { %2003 = vmatprep.subr.mxu0 %v3610_v61 }
0x10a4   :  { %2004 = vmatpush1.msra.mxu0 %v3613_v53  ;;  %v1792_v32 = vpop.permute.xlu0 %1791 }
0x10a5   :  { %2005 = vmatprep.subr.mxu0 %v3616_v27  ;;  %v1794_v34 = vsel %vm124_vm0, %v1792_v32, %v3704_v29 }
0x10a6   :  { %2006 = vmatpush1.msra.mxu0 %v3621_v52  ;;  %2783 = vmatmul.mubr.msk.f32.vlgmr.msra.gmra.mxu1 %vm208_vm1, %v1794_v34 }
0x10a7   :  { %2007 = vmatprep.subr.mxu0 %v3625_v47  ;;  %2120 = vmatpush1.msra.mxu1 %v3722_v37 }
0x10a8   :  { %2008 = vmatpush1.msra.mxu0 %v3629_v57  ;;  %2121 = vmatprep.subr.mxu1 %v3726_v38 }
0x10a9   :  { %2009 = vmatprep.subr.mxu0 %v3633_v36  ;;  %2122 = vmatpush1.msra.mxu1 %v3730_v40 }
0x10aa   :  { %2010 = vmatpush1.msra.mxu0 %v3637_v10  ;;  %2123 = vmatprep.subr.mxu1 %v3734_v41 }
0x10ab   :  { %2011 = vmatprep.subr.mxu0 %v3641_v35  ;;  %2124 = vmatpush1.msra.mxu1 %v3738_v42 }
0x10ac   :  { %2012 = vmatpush1.msra.mxu0 %v3645_v54  ;;  %2125 = vmatprep.subr.mxu1 %v3742_v43 }
0x10ad   :  { %2013 = vmatprep.subr.mxu0 %v3649_v55  ;;  %2126 = vmatpush1.msra.mxu1 %v3746_v44 }
0x10ae   :  { %2014 = vmatpush1.msra.mxu0 %v3653_v56  ;;  %2159 = vmatprep.mubr.f32.mxu1 %v3956_v31 }
0x10af   :  { %2015 = vmatprep.subr.mxu0 %v3657_v58  ;;  %2296 = vmatprep.subr.mxu1 %v3550_v2  ;;  %v3765_v2 = vld [vmem:[#allocation5 + $0xe0] sm:$0xff] }
0x10b0   :  { %2016 = vmatpush1.msra.mxu0 %v3663_v60 }
0x10b1   :  { %2785 = vmatmul.mubr.msk.f32.vlgmr.msra.gmra.mxu0 %vm208_vm1, %v1977_v45  ;;  %2185 = vmatprep.subr.mxu0 %v3667_v62 }
0x10b2   :  { %2186 = vmatpush1.msra.mxu0 %v3758_v33  ;;  %2233 = vmatprep.mubr.f32.mxu0 %v3956_v31 }
0x10b3   :  { %2187 = vmatprep.subr.mxu0 %v3762_v7 }
0x10b4   :  { %2188 = vmatpush1.msra.mxu0 %v3765_v2 }
0x10b5   :  { %2189 = vmatprep.subr.mxu0 %v3768_v13 }
0x10b6   :  { %2190 = vmatpush1.msra.mxu0 %v3771_v1 }
0x10b7   :  { %2191 = vmatprep.subr.mxu0 %v3774_v39 }
0x10b8   :  { %2192 = vmatpush1.msra.mxu0 %v3777_v8 }
0x10b9   :  { %2193 = vmatprep.subr.mxu0 %v3780_v46 }
0x10ba   :  { %2194 = vmatpush1.msra.mxu0 %v3783_v5 }
0x10bb   :  { %2195 = vmatprep.subr.mxu0 %v3786_v49 }
0x10bc   :  { %2196 = vmatpush1.msra.mxu0 %v3789_v3 }
0x10bd   :  { %2197 = vmatprep.subr.mxu0 %v3792_v4 }
0x10be   :  { %2198 = vmatpush1.msra.mxu0 %v3795_v9 }
0x10bf   :  { %2199 = vmatprep.subr.mxu0 %v3798_v11 }
0x10c0   :  { %2200 = vmatpush1.msra.mxu0 %v3801_v14 }
0x10c1   :  { %2414 = vmatprep.subr.mxu0 %v3686_v12 }
0x1161   :  { %v1866_v16 = vpop.f32.mrf.mxu0 }
0x1163   :  { %v1868_v23 = vpop.f32.mrf.mxu0 }
0x1166   :  { %v1940_v18 = vpop.f32.mrf.mxu1 }
0x1167   :  { %v1941_v21 = vadd.f32 %v1940_v18, %v1866_v16 }
0x1168   :  { %v1942_v32 = vpop.f32.mrf.mxu1 }
0x1169   :  { %v1945_v22 = vadd.f32 %v1941_v21, %v3357_v63  ;;  %v1943_v16 = vadd.f32 %v1942_v32, %v1868_v23 }
0x116b   :  { %2922 = vtanh.f32 %v1945_v22  ;;  %v2784_v15 = vmul.f32 -1.442695, %v1945_v22  ;;  %v1946_v21 = vadd.f32 %v1943_v16, %v3210_v30 }
0x1171   :  { %v2051_v0 = vpop.f32.mrf.mxu0 }
0x1172   :  { %v2052_v48 = vadd.f32 %v2051_v0, %v1978_v24 }
0x1174   :  { %2924 = vtanh.f32 %v2052_v48  ;;  %v2786_v12 = vmul.f32 -1.442695, %v2052_v48  ;;  %v2053_v48 = vpop.f32.mrf.mxu0 }
0x1175   :  { %2926 = vpow2.f32 %v2784_v15 }
0x1176   :  { %2928 = vpow2.f32 %v2786_v12 }
0x1178   :  { %v2923_v59 = vpop.eup %2922 }
0x1179   :  { %1956 = vrot.lane.b32.xlu0 %v2923_v59, %s3073_s3  ;;  %v1979_v59 = vrot.slane %v3583_v17, 4 }
0x1181   :  { %v2925_v51 = vpop.eup %2924 }
0x1182   :  { %2065 = vrot.lane.b32.xlu1 %v2925_v51, %s3073_s3  ;;  %v2927_v19 = vpop.eup %2926  ;;  %v2054_v51 = vadd.f32 %v2053_v48, %v1979_v59 }
0x1183   :  { %v1950_v6 = vadd.f32 1.0, %v2927_v19  ;;  %v2929_v26 = vpop.eup %2928 }
0x1184   :  { %v2059_v28 = vadd.f32 1.0, %v2929_v26 }
0x1185   :  { %2930 = vrcp.f32 %v1950_v6 }
0x1186   :  { %2932 = vrcp.f32 %v2059_v28 }
0x1192   :  { %v2931_v34 = vpop.eup %2930 }
0x1193   :  { %v2933_v22 = vpop.eup %2932  ;;  %v1954_v23 = vmul.f32 %v2931_v34, %v3704_v29 }
0x1194   :  { %v2063_v19 = vmul.f32 %v2933_v22, %v3700_v50 }
0x11eb   :  { %v1957_v45 = vpop.permute.xlu0 %1956 }
0x11ec   :  { %v1959_v18 = vmul.f32 %v2931_v34, %v1957_v45 }
0x11ee   :  { %1961 = vrot.lane.b32.xlu0 %v1959_v18, %s3073_s3 }
0x11f2   :  { %1967 = vrot.lane.b32.xlu0 %v1946_v21, %s3073_s3 }
0x11f4   :  { %v2066_v24 = vpop.permute.xlu1 %2065 }
0x11f5   :  { %v2068_v0 = vmul.f32 %v2933_v22, %v2066_v24 }
0x11f7   :  { %2070 = vrot.lane.b32.xlu1 %v2068_v0, %s3073_s3 }
0x11fb   :  { %2076 = vrot.lane.b32.xlu1 %v2054_v51, %s3073_s3 }
0x1260   :  { %v1962_v15 = vpop.permute.xlu0 %1961 }
0x1261   :  { %v3816_v12 = vadd.f32 %v1962_v15, %v1954_v23 }
0x1263   :  { %2934 = vtanh.f32 %v3816_v12 }
0x1264   :  { %v1968_v32 = vpop.permute.xlu0 %1967 }
0x1269   :  { %v2071_v6 = vpop.permute.xlu1 %2070 }
0x126a   :  { %v3820_v26 = vadd.f32 %v2071_v6, %v2063_v19 }
0x126c   :  { %2936 = vtanh.f32 %v3820_v26 }
0x126d   :  { %v2077_v18 = vpop.permute.xlu1 %2076 }
0x1270   :  { %v2935_v28 = vpop.eup %2934 }
0x1271   :  { %v1970_v45 = vadd.f32 %v2935_v28, %v1968_v32 }
0x1273   :  { %1972 = vrot.lane.b32.xlu0 %v1970_v45, %s3073_s3 }
0x1279   :  { %v2937_v16 = vpop.eup %2936 }
0x127a   :  { %v2079_v29 = vadd.f32 %v2937_v16, %v2077_v18 }
0x127c   :  { %2081 = vrot.lane.b32.xlu1 %v2079_v29, %s3073_s3 }
0x12e5   :  { %v1973_v21 = vpop.permute.xlu0 %1972 }
0x12e6   :  { %v1975_v24 = vmul.f32 %v2931_v34, %v1973_v21 }
0x12e8   :  { %2086 = vrot.lane.b32.xlu0 %v1975_v24, %s3074_s0 }
0x12ee   :  { %v2082_v50 = vpop.permute.xlu1 %2081 }
0x12ef   :  { %v2084_v0 = vmul.f32 %v2933_v22, %v2082_v50 }
0x12f1   :  { %2091 = vrot.lane.b32.xlu1 %v2084_v0, %s3074_s0 }
0x135a   :  { %v2087_v48 = vpop.permute.xlu0 %2086 }
0x135b   :  { %v2089_v59 = vsel %vm124_vm0, %v2087_v48, %v3816_v12 }
0x135c   :  { %2788 = vmatmul.mubr.msk.f32.vlgmr.msra.gmra.mxu0 %vm208_vm1, %v2089_v59 }
0x135d   :  { %2415 = vmatpush1.msra.mxu0 %v3722_v37  ;;  %2454 = vmatprep.mubr.f32.mxu0 %v3956_v31 }
0x135e   :  { %2416 = vmatprep.subr.mxu0 %v3726_v38 }
0x135f   :  { %2417 = vmatpush1.msra.mxu0 %v3730_v40 }
0x1360   :  { %2418 = vmatprep.subr.mxu0 %v3734_v41 }
0x1361   :  { %2419 = vmatpush1.msra.mxu0 %v3738_v42 }
0x1362   :  { %2420 = vmatprep.subr.mxu0 %v3742_v43 }
0x1363   :  { %v2092_v34 = vpop.permute.xlu1 %2091  ;;  %2421 = vmatpush1.msra.mxu0 %v3746_v44 }
0x1364   :  { %2787 = vmatmul.mubr.msk.f32.vlgmr.msra.gmra.mxu1 %vm124_vm0, %v2092_v34  ;;  %2807 = vmatprep.subr.mxu0 %v3956_v31 }
0x1365   :  { %2297 = vmatpush1.msra.mxu1 %v3606_v25  ;;  %2344 = vmatprep.mubr.f32.mxu1 %v3956_v31  ;;  %v2272_v25 = vsel %vm124_vm0, %v2092_v34, %v3820_v26 }
0x1366   :  { %2298 = vmatprep.subr.mxu1 %v3610_v61 }
0x1367   :  { %2299 = vmatpush1.msra.mxu1 %v3613_v53 }
0x1368   :  { %2300 = vmatprep.subr.mxu1 %v3616_v27 }
0x1369   :  { %2301 = vmatpush1.msra.mxu1 %v3621_v52 }
0x136a   :  { %2302 = vmatprep.subr.mxu1 %v3625_v47 }
0x136b   :  { %2303 = vmatpush1.msra.mxu1 %v3629_v57  ;;  %v2273_v57 = vrot.slane %v3578_v20, 6 }
0x136c   :  { %2304 = vmatprep.subr.mxu1 %v3633_v36 }
0x136d   :  { %2305 = vmatpush1.msra.mxu1 %v3637_v10 }
0x136e   :  { %2306 = vmatprep.subr.mxu1 %v3641_v35 }
0x136f   :  { %2307 = vmatpush1.msra.mxu1 %v3645_v54 }
0x1370   :  { %2308 = vmatprep.subr.mxu1 %v3649_v55 }
0x1371   :  { %2309 = vmatpush1.msra.mxu1 %v3653_v56 }
0x1372   :  { %2310 = vmatprep.subr.mxu1 %v3657_v58 }
0x1373   :  { %2311 = vmatpush1.msra.mxu1 %v3663_v60 }
0x1374   :  { %2790 = vmatmul.mubr.msk.f32.vlgmr.msra.gmra.mxu1 %vm208_vm1, %v2272_v25  ;;  %2480 = vmatprep.subr.mxu1 %v3667_v62 }
0x1375   :  { %2481 = vmatpush1.msra.mxu1 %v3758_v33  ;;  %2528 = vmatprep.mubr.f32.mxu1 %v3956_v31 }
0x1376   :  { %2482 = vmatprep.subr.mxu1 %v3762_v7 }
0x1377   :  { %2483 = vmatpush1.msra.mxu1 %v3765_v2 }
0x1378   :  { %2484 = vmatprep.subr.mxu1 %v3768_v13  ;;  %v2274_v13 = vrot.slane %v3583_v17, 6 }
0x1379   :  { %2485 = vmatpush1.msra.mxu1 %v3771_v1 }
0x137a   :  { %2486 = vmatprep.subr.mxu1 %v3774_v39 }
0x137b   :  { %2487 = vmatpush1.msra.mxu1 %v3777_v8 }
0x137c   :  { %2488 = vmatprep.subr.mxu1 %v3780_v46 }
0x137d   :  { %2489 = vmatpush1.msra.mxu1 %v3783_v5 }
0x137e   :  { %2490 = vmatprep.subr.mxu1 %v3786_v49 }
0x137f   :  { %2491 = vmatpush1.msra.mxu1 %v3789_v3 }
0x1380   :  { %2492 = vmatprep.subr.mxu1 %v3792_v4 }
0x1381   :  { %2493 = vmatpush1.msra.mxu1 %v3795_v9 }
0x1382   :  { %2494 = vmatprep.subr.mxu1 %v3798_v11 }
0x1383   :  { %2495 = vmatpush1.msra.mxu1 %v3801_v14 }
0x141c   :  { %v2235_v61 = vpop.f32.mrf.mxu0 }
0x141e   :  { %v2237_v20 = vpop.f32.mrf.mxu0 }
0x1424   :  { %v2161_v53 = vpop.f32.mrf.mxu1 }
0x1425   :  { %v2236_v27 = vadd.f32 %v2235_v61, %v2161_v53 }
0x1426   :  { %v2163_v47 = vpop.f32.mrf.mxu1 }
0x1427   :  { %v2240_v52 = vadd.f32 %v2236_v27, %v3357_v63  ;;  %v2238_v41 = vadd.f32 %v2237_v20, %v2163_v47  ;;  %v2567_v47 = vld [vmem:[%s3943_s4 + $0x8] sm:$0xff] }
0x1429   :  { %2938 = vtanh.f32 %v2240_v52  ;;  %v2789_v55 = vmul.f32 -1.442695, %v2240_v52  ;;  %v2241_v43 = vadd.f32 %v2238_v41, %v3210_v30  ;;  %v2568_v52 = vld [vmem:[%s3943_s4 + $0x10] sm:$0xff]  ;;  %v2797_v41 = vld [vmem:[%s3946_s7] ss:$0 sm:$0xff] }
0x1434   :  { %v2346_v36 = vpop.f32.mrf.mxu1 }
0x1435   :  { %v2347_v10 = vadd.f32 %v2346_v36, %v2273_v57  ;;  %v2566_v57 = vld [vmem:[%s3943_s4] sm:$0xff] }
0x1436   :  { %v2939_v35 = vpop.eup %2938  ;;  %v2348_v2 = vpop.f32.mrf.mxu1 }
0x1437   :  { %2940 = vtanh.f32 %v2347_v10  ;;  %2251 = vrot.lane.b32.xlu1 %v2939_v35, %s3073_s3  ;;  %v2791_v56 = vmul.f32 -1.442695, %v2347_v10  ;;  %v2349_v1 = vadd.f32 %v2348_v2, %v2274_v13 }
0x1438   :  { %2942 = vpow2.f32 %v2789_v55 }
0x1439   :  { %2944 = vpow2.f32 %v2791_v56 }
0x1444   :  { %v2941_v54 = vpop.eup %2940 }
0x1445   :  { %2360 = vrot.lane.b32.xlu0 %v2941_v54, %s3073_s3  ;;  %v2943_v58 = vpop.eup %2942 }
0x1446   :  { %v2245_v60 = vadd.f32 1.0, %v2943_v58  ;;  %v2945_v62 = vpop.eup %2944  ;;  %v2654_v58 = vld [vmem:[%s3945_s6 + $0x8] sm:$0xff] }
0x1447   :  { %v2354_v37 = vadd.f32 1.0, %v2945_v62  ;;  %v2795_v62 = vld [vmem:[%s3944_s5] ss:$0 sm:$0xff] }
0x1448   :  { %2946 = vrcp.f32 %v2245_v60  ;;  %v2653_v60 = vld [vmem:[%s3945_s6] sm:$0xff]  ;;  %s3042_s6 = scalar_lea.vmem %s2745_s1, 32 }
0x1449   :  { %2948 = vrcp.f32 %v2354_v37  ;;  %p3043_p10 = scmp.ne.s32.totalorder %s2745_s1, %s3042_s6  ;;  %p3048_p12 = scmp.lt.s32.totalorder %s3042_s6, %s3042_s6 }
0x144b   :  { %p3049_p13 = por %p3048_p12, %p3047_p11 }
0x144d   :  { %p3050_p0 = pnand %p3049_p13, %p3043_p10 }
0x1455   :  { %v2947_v38 = vpop.eup %2946 }
0x1456   :  { %v2949_v44 = vpop.eup %2948  ;;  %v2249_v39 = vmul.f32 %v2947_v38, %v3816_v12 }
0x1457   :  { %v2358_v5 = vmul.f32 %v2949_v44, %v3820_v26 }
0x14a9   :  { %v2252_v40 = vpop.permute.xlu1 %2251 }
0x14aa   :  { %v2254_v42 = vmul.f32 %v2947_v38, %v2252_v40 }
0x14ac   :  { %2256 = vrot.lane.b32.xlu1 %v2254_v42, %s3073_s3 }
0x14b0   :  { %2262 = vrot.lane.b32.xlu1 %v2241_v43, %s3073_s3 }
0x14b7   :  { %v2361_v33 = vpop.permute.xlu0 %2360 }
0x14b8   :  { %v2363_v7 = vmul.f32 %v2949_v44, %v2361_v33 }
0x14ba   :  { %2365 = vrot.lane.b32.xlu0 %v2363_v7, %s3073_s3 }
0x14be   :  { %2371 = vrot.lane.b32.xlu0 %v2349_v1, %s3073_s3 }
0x151e   :  { %v2257_v8 = vpop.permute.xlu1 %2256 }
0x151f   :  { %v2259_v46 = vadd.f32 %v2257_v8, %v2249_v39 }
0x1521   :  { %2950 = vtanh.f32 %v2259_v46 }
0x1522   :  { %v2263_v9 = vpop.permute.xlu1 %2262 }
0x152c   :  { %v2366_v49 = vpop.permute.xlu0 %2365 }
0x152d   :  { %v2368_v3 = vadd.f32 %v2366_v49, %v2358_v5 }
0x152e   :  { %v2951_v4 = vpop.eup %2950 }
0x152f   :  { %v2265_v11 = vadd.f32 %v2951_v4, %v2263_v9  ;;  %2952 = vtanh.f32 %v2368_v3 }
0x1530   :  { %v2372_v14 = vpop.permute.xlu0 %2371 }
0x1531   :  { %2267 = vrot.lane.b32.xlu1 %v2265_v11, %s3073_s3 }
0x153c   :  { %v2953_v17 = vpop.eup %2952 }
0x153d   :  { %v2374_v22 = vadd.f32 %v2953_v17, %v2372_v14 }
0x153f   :  { %2376 = vrot.lane.b32.xlu0 %v2374_v22, %s3073_s3 }
0x15a3   :  { %v2268_v51 = vpop.permute.xlu1 %2267 }
0x15a4   :  { %v2270_v23 = vmul.f32 %v2947_v38, %v2268_v51 }
0x15a6   :  { %2381 = vrot.lane.b32.xlu1 %v2270_v23, %s3074_s0 }
0x15b1   :  { %v2377_v15 = vpop.permute.xlu0 %2376 }
0x15b2   :  { %v2379_v12 = vmul.f32 %v2949_v44, %v2377_v15 }
0x15b4   :  { %2386 = vrot.lane.b32.xlu0 %v2379_v12, %s3074_s0 }
0x1618   :  { %v2382_v19 = vpop.permute.xlu1 %2381 }
0x1619   :  { %v2384_v6 = vsel %vm124_vm0, %v2382_v19, %v2259_v46 }
0x161a   :  { %2793 = vmatmul.mubr.msk.f32.vlgmr.msra.gmra.mxu1 %vm208_vm1, %v2384_v6 }
0x1626   :  { %v2387_v26 = vpop.permute.xlu0 %2386 }
0x1627   :  { %2792 = vmatmul.mubr.msk.f32.vlgmr.msra.gmra.mxu0 %vm124_vm0, %v2387_v26 }
0x1628   :  { %2815 = vmatprep.mubr.msk.f32.mxu0 %vm3075_vm2, %v3956_v31 }
0x16da   :  { %v2530_v28 = vpop.f32.mrf.mxu1 }
0x16dc   :  { %v2532_v29 = vpop.f32.mrf.mxu1 }
0x16e7   :  { %v2456_v32 = vpop.f32.mrf.mxu0 }
0x16e8   :  { %v2531_v45 = vadd.f32 %v2530_v28, %v2456_v32 }
0x16e9   :  { %v2458_v18 = vpop.f32.mrf.mxu0 }
0x16ea   :  { %v2535_v16 = vadd.f32 %v2531_v45, %v3357_v63  ;;  %v2533_v21 = vadd.f32 %v2532_v29, %v2458_v18 }
0x16ec   :  { %2954 = vtanh.f32 %v2535_v16  ;;  %v2536_v50 = vadd.f32 %v2533_v21, %v3210_v30  ;;  %v2794_v0 = vmul.f32 -1.442695, %v2535_v16  ;;  %v2569_v30 = vld [vmem:[%s3943_s4 + $0x18] sm:$0xff] }
0x16ed   :  { %2808 = vmatpush3.msra.mxu0 %v2569_v30 }
0x16ee   :  { %2956 = vpow2.f32 %v2794_v0  ;;  %2809 = vmatprep.subr.mxu0 %v3956_v31 }
0x16ef   :  { %2810 = vmatpush3.msra.mxu0 %v2568_v52 }
0x16f0   :  { %2811 = vmatprep.subr.mxu0 %v3956_v31 }
0x16f1   :  { %2812 = vmatpush3.msra.mxu0 %v2567_v47 }
0x16f2   :  { %2813 = vmatprep.subr.mxu0 %v3956_v31 }
0x16f3   :  { %2814 = vmatpush3.msra.mxu0 %v2566_v57 }
0x16f4   :  { %2818 = vmatprep.subr.mxu0 %v3956_v31 }
0x16f9   :  { %v2955_v24 = vpop.eup %2954 }
0x16fa   :  { %2546 = vrot.lane.b32.xlu1 %v2955_v24, %s3073_s3 }
0x16fb   :  { %v2957_v48 = vpop.eup %2956 }
0x16fc   :  { %v2540_v59 = vadd.f32 1.0, %v2957_v48 }
0x16fe   :  { %2557 = vrot.lane.b32.xlu1 %v2536_v50, %s3073_s3  ;;  %2958 = vrcp.f32 %v2540_v59 }
0x170b   :  { %v2959_v34 = vpop.eup %2958 }
0x170c   :  { %v2544_v63 = vmul.f32 %v2959_v34, %v2259_v46 }
0x176c   :  { %v2547_v25 = vpop.permute.xlu1 %2546 }
0x176d   :  { %v2549_v61 = vmul.f32 %v2959_v34, %v2547_v25 }
0x176f   :  { %2551 = vrot.lane.b32.xlu0 %v2549_v61, %s3073_s3 }
0x1770   :  { %v2558_v10 = vpop.permute.xlu1 %2557 }
0x17e1   :  { %v2552_v53 = vpop.permute.xlu0 %2551 }
0x17e2   :  { %v2554_v27 = vadd.f32 %v2552_v53, %v2544_v63 }
0x17e4   :  { %2960 = vtanh.f32 %v2554_v27 }
0x17f1   :  { %v2961_v36 = vpop.eup %2960 }
0x17f2   :  { %v2560_v35 = vadd.f32 %v2961_v36, %v2558_v10 }
0x17f4   :  { %2562 = vrot.lane.b32.xlu0 %v2560_v35, %s3073_s3 }
0x1866   :  { %v2563_v54 = vpop.permute.xlu0 %2562 }
0x1867   :  { %v2565_v55 = vmul.f32 %v2959_v34, %v2563_v54 }
0x1869   :  { %2578 = vrot.lane.b32.xlu1 %v2565_v55, %s3074_s0 }
0x18db   :  { %v2579_v56 = vpop.permute.xlu1 %2578 }
0x18dc   :  { %2816 = vmatmul.mubr.msk.f32.vlgmr.msra.gmra.mxu0 %vm124_vm0, %v2579_v56 }
0x18dd   :  { %2822 = vmatprep.mubr.msk.f32.mxu0 %vm3075_vm2, %v3956_v31  ;;  %2819 = vmatpush3.msra.mxu0 %v2654_v58 }
0x18de   :  { %2820 = vmatprep.subr.mxu0 %v3956_v31 }
0x18df   :  { %2821 = vmatpush3.msra.mxu0 %v2653_v60 }
0x199c   :  { %v2648_v37 = vpop.f32.mrf.mxu0 }
0x199d   :  { %v2649_v38 = vadd.f32 %v2795_v62, %v2648_v37 }
0x199e   :  { %v2817_v20 = vpop.f32.mrf.mxu0 }
0x199f   :  { %v2652_v40 = vmax.f32 %v2649_v38, 0.0 }
0x19a1   :  { %2823 = vmatmul.mubr.msk.f32.vlgmr.msra.gmra.mxu0 %vm2662_vm3, %v2652_v40 }
0x1a61   :  { %v2732_v31 = vpop.f32.mrf.mxu0 }
0x1a62   :  { %v2733_v42 = vadd.f32 %v2797_v41, %v2732_v31 }
0x1a63   :  { %v2824_v43 = vpop.f32.mrf.mxu0 }
0x1a64   :  { %2737 = vst.msk [vmem:[#allocation7] sm:$0x3] %vm2736_vm4, %v2733_v42 }
0x1a65   :  { %3053 = shalt.err (!%p3050_p0)
}
0x1a66   :  { %2747 = dma.vmem_to_hbm [thread:$0]  %s2745_s1, 32, %s3947_s8, [#allocation4]  }
0x1a67   :  { %3066 = dma.done.wait [#allocation4], 32  }
0x1a68   :  { %3067 = vsyncadd [#allocation4], 4294967264 }
0x1a69   :  { %2751 = vsyncpa [#allocation3], 1 }
0x1a6a   :  { %2752 = vsyncpa [#allocation6], 1 }
0x1a6b   :  { %2753 = vsyncpa [#allocation4], 1 }

</bundles_post_ra>
